<compile_context>
chip_gen: v6e
topology: v6e:2x2x1
jax: 0.10.0
libtpu: 0.0.40
codegen_flags: <defaults>
</compile_context>

<pallas_src>
import math
import jax
import jax.numpy as jnp
from jax.experimental import pallas as pl
from jax.experimental.pallas import tpu as pltpu

# small-model hyperparameters (shape-consistent with the torch module)
D_MODEL = 32
D_K = 8
D_V = 8
H = 4
D_FF = 64
EPS = 1e-5                      # torch nn.LayerNorm default
NEG_INF = -1e30                 # stand-in for -inf in masked_fill

HDK = H * D_K                   # 32
HDV = H * D_V                   # 32
QKV_W = 3 * HDK                 # 96

# column offsets inside the packed weight slab (all sub-matrices have 32 rows)
_OFF_SA_QKV = 0                              # (D, 96)  [Wq | Wk | Wv] self-att
_OFF_CA_Q = _OFF_SA_QKV + QKV_W              # 96   (D, 32)  Wq cross-att
_OFF_CA_KV = _OFF_CA_Q + HDK                 # 128  (D, 64)  [Wk | Wv] cross-att
_OFF_SA_O = _OFF_CA_KV + HDK + HDV           # 192  (H*dv, D) Wo self-att
_OFF_CA_O = _OFF_SA_O + D_MODEL              # 224  (H*dv, D) Wo cross-att
_OFF_W1 = _OFF_CA_O + D_MODEL                # 256  (D, d_ff)
_OFF_W2T = _OFF_W1 + D_FF                    # 320  (D, d_ff) == W2^T
W_SLAB_W = _OFF_W2T + D_FF                   # 384 = 3 * 128 (lane dense)
VEC_W = 128                                  # lane width of the vector slab


def _layer_norm(x, gamma, beta):
    mu = jnp.mean(x, axis=-1, keepdims=True)
    var = jnp.mean((x - mu) ** 2, axis=-1, keepdims=True)
    return (x - mu) * jax.lax.rsqrt(var + EPS) * gamma + beta


# ---------------------------------------------------------------------------
# Pallas kernel: whole problem in one invocation, everything resident in VMEM
# ---------------------------------------------------------------------------
def decoder_layer_kernel(x_ref, enc_ref, mp_ref, bself_ref, benc_ref,
                         w_ref, vec_ref, out_ref):
    f32 = jnp.float32
    B, Sq, D = x_ref.shape
    Sk = enc_ref.shape[1]
    N = B * Sq
    scale = 1.0 / math.sqrt(D_K)

    x = x_ref[...].reshape(N, D)                      # (N, D)
    enc = enc_ref[...].reshape(B * Sk, D)             # (B*Sk, D)
    mp = mp_ref[...].reshape(N, 1)                    # (N, 1)
    bias_self = bself_ref[...]                        # (B, Sq, Sq) 0 / -1e30
    bias_enc = benc_ref[...]                          # (B, Sq, Sk) 0 / -1e30

    w = w_ref[...]                                    # (D, 384)
    vec = vec_ref[...]                                # (8, 128)

    def attn_core(q3, k3, v3, bias3, w_o, b_o):
        # q3: (B, Sq, H*dk); k3: (B, Skv, H*dk); v3: (B, Skv, H*dv)
        # bias3: (B, Sq, Skv) additive mask bias.  Heads split only here.
        outs = []
        for h in range(H):
            qh = q3[:, :, h * D_K:(h + 1) * D_K]
            kh = k3[:, :, h * D_K:(h + 1) * D_K]
            vh = v3[:, :, h * D_V:(h + 1) * D_V]
            s = jnp.einsum('bqd,bkd->bqk', qh, kh,
                           preferred_element_type=f32) * scale + bias3
            p = jnp.exp(s)                            # masked -> exp(-1e30)=0
            p = p / jnp.sum(p, axis=-1, keepdims=True)
            outs.append(jnp.einsum('bqk,bkd->bqd', p, vh,
                                   preferred_element_type=f32))
        o = jnp.concatenate(outs, axis=-1).reshape(N, HDV)   # head-major concat
        return jnp.dot(o, w_o, preferred_element_type=f32) + b_o   # (N, D)

    # -------------------- self attention + residual + LN --------------------
    w_sa_qkv = w[:, _OFF_SA_QKV:_OFF_SA_QKV + QKV_W]          # (D, 96)
    b_sa_qkv = vec[0:1, 0:QKV_W]                              # (1, 96)
    qkv = jnp.dot(x, w_sa_qkv, preferred_element_type=f32) + b_sa_qkv  # (N, 96)
    q3 = qkv[:, 0:HDK].reshape(B, Sq, HDK)
    k3 = qkv[:, HDK:2 * HDK].reshape(B, Sq, HDK)
    v3 = qkv[:, 2 * HDK:3 * HDK].reshape(B, Sq, HDV)

    w_sa_o = w[:, _OFF_SA_O:_OFF_SA_O + D_MODEL]              # (H*dv, D)
    b_sa_o = vec[2:3, 0:D_MODEL]
    o_sa = attn_core(q3, k3, v3, bias_self, w_sa_o, b_sa_o)   # (N, D)
    g_sa = vec[4:5, 0:D_MODEL]
    be_sa = vec[4:5, D_MODEL:2 * D_MODEL]
    sa = _layer_norm(x + o_sa, g_sa, be_sa) * mp              # (N, D)

    # -------------------- cross attention + residual + LN -------------------
    w_ca_q = w[:, _OFF_CA_Q:_OFF_CA_Q + HDK]                  # (D, 32)
    b_ca_q = vec[1:2, 0:HDK]
    w_ca_kv = w[:, _OFF_CA_KV:_OFF_CA_KV + HDK + HDV]         # (D, 64)
    b_ca_kv = vec[1:2, HDK:HDK + HDK + HDV]                   # (1, 64)
    qc = jnp.dot(sa, w_ca_q, preferred_element_type=f32) + b_ca_q     # (N, 32)
    kvc = jnp.dot(enc, w_ca_kv, preferred_element_type=f32) + b_ca_kv  # (B*Sk,64)
    qc3 = qc.reshape(B, Sq, HDK)
    kc3 = kvc[:, 0:HDK].reshape(B, Sk, HDK)
    vc3 = kvc[:, HDK:HDK + HDV].reshape(B, Sk, HDV)

    w_ca_o = w[:, _OFF_CA_O:_OFF_CA_O + D_MODEL]
    b_ca_o = vec[2:3, D_MODEL:2 * D_MODEL]
    o_ca = attn_core(qc3, kc3, vc3, bias_enc, w_ca_o, b_ca_o)  # (N, D)
    g_ca = vec[5:6, 0:D_MODEL]
    be_ca = vec[5:6, D_MODEL:2 * D_MODEL]
    ca = _layer_norm(sa + o_ca, g_ca, be_ca) * mp              # (N, D)

    # -------------------- position-wise FFN + residual + LN -----------------
    w1 = w[:, _OFF_W1:_OFF_W1 + D_FF]                          # (D, d_ff)
    w2t = w[:, _OFF_W2T:_OFF_W2T + D_FF]                       # (D, d_ff)=W2^T
    b1 = vec[3:4, 0:D_FF]
    b2 = vec[3:4, D_FF:D_FF + D_MODEL]
    h1 = jnp.maximum(jnp.dot(ca, w1, preferred_element_type=f32) + b1, 0.0)
    o_ff = jax.lax.dot_general(h1, w2t, (((1,), (1,)), ((), ())),
                               preferred_element_type=f32) + b2
    g_ff = vec[6:7, 0:D_MODEL]
    be_ff = vec[6:7, D_MODEL:2 * D_MODEL]
    ff = _layer_norm(ca + o_ff, g_ff, be_ff) * mp              # (N, D)

    out_ref[...] = ff.reshape(B, Sq, D_MODEL).astype(out_ref.dtype)


# ---------------------------------------------------------------------------
# wrapper: no grid (one step), whole arrays resident in VMEM, 7 operands
# ---------------------------------------------------------------------------
def decoder_layer(x, enc_out, mask_pad, mask_self_att, mask_enc_att, packed):
    B, Sq, D = x.shape
    assert D == D_MODEL

    # additive attention bias precomputed host-side: 0 keeps, -1e30 masks
    bias_self = mask_self_att * NEG_INF
    bias_enc = mask_enc_att * NEG_INF

    vmem = pl.BlockSpec(memory_space=pltpu.MemorySpace.VMEM)
    return pl.pallas_call(
        decoder_layer_kernel,
        out_shape=jax.ShapeDtypeStruct((B, Sq, D), jnp.float32),
        in_specs=[vmem] * 7,
        out_specs=vmem,
    )(x, enc_out, mask_pad, bias_self, bias_enc,
      packed["w_all"], packed["vec"])


# ---------------------------------------------------------------------------
# parameter creation (torch-like shapes) + host-side packing into 2 slabs
# ---------------------------------------------------------------------------
def make_params(key):
    std = 0.02
    hdk, hdv = H * D_K, H * D_V
    ks = iter(jax.random.split(key, 32))

    def w(shape):
        return std * jax.random.normal(next(ks), shape, jnp.float32)

    def ln_g():
        return 1.0 + 0.1 * jax.random.normal(next(ks), (D_MODEL,), jnp.float32)

    def ln_b():
        return 0.1 * jax.random.normal(next(ks), (D_MODEL,), jnp.float32)

    p = {}
    for pre in ("sa", "ca"):
        p[f"{pre}_wq"] = w((D_MODEL, hdk)); p[f"{pre}_bq"] = w((hdk,))
        p[f"{pre}_wk"] = w((D_MODEL, hdk)); p[f"{pre}_bk"] = w((hdk,))
        p[f"{pre}_wv"] = w((D_MODEL, hdv)); p[f"{pre}_bv"] = w((hdv,))
        p[f"{pre}_wo"] = w((hdv, D_MODEL)); p[f"{pre}_bo"] = w((D_MODEL,))
        p[f"{pre}_ln_g"] = ln_g(); p[f"{pre}_ln_b"] = ln_b()
    p["w1"] = w((D_MODEL, D_FF)); p["b1"] = w((D_FF,))
    p["w2"] = w((D_FF, D_MODEL)); p["b2"] = w((D_MODEL,))
    p["ff_ln_g"] = ln_g(); p["ff_ln_b"] = ln_b()
    return p


def pack_params(p):
    # weight slab: (32, 384) -- lane dense (3 x 128)
    w_all = jnp.concatenate([
        p["sa_wq"], p["sa_wk"], p["sa_wv"],      # 0:96    self-att Q|K|V
        p["ca_wq"],                              # 96:128  cross-att Q
        p["ca_wk"], p["ca_wv"],                  # 128:192 cross-att K|V
        p["sa_wo"], p["ca_wo"],                  # 192:256 output projections
        p["w1"], p["w2"].T,                      # 256:384 FFN
    ], axis=1)
    assert w_all.shape == (D_MODEL, W_SLAB_W)

    def row(parts):
        v = jnp.concatenate(parts)
        return jnp.pad(v, (0, VEC_W - v.shape[0]))

    vec = jnp.stack([
        row([p["sa_bq"], p["sa_bk"], p["sa_bv"]]),      # row 0 [0:96]
        row([p["ca_bq"], p["ca_bk"], p["ca_bv"]]),      # row 1 [0:32] | [32:96]
        row([p["sa_bo"], p["ca_bo"]]),                  # row 2 [0:32] | [32:64]
        row([p["b1"], p["b2"]]),                        # row 3 [0:64] | [64:96]
        row([p["sa_ln_g"], p["sa_ln_b"]]),              # row 4
        row([p["ca_ln_g"], p["ca_ln_b"]]),              # row 5
        row([p["ff_ln_g"], p["ff_ln_b"]]),              # row 6
        jnp.zeros((VEC_W,), jnp.float32),               # row 7 (pad)
    ], axis=0)
    return dict(w_all=w_all, vec=vec)


# ---------------------------------------------------------------------------
# pure-JAX reference (torch-equivalent math) for a correctness check
# ---------------------------------------------------------------------------
def reference_forward(x, enc_out, mask_pad, mask_self_att, mask_enc_att, p):
    def mha(q_in, kv_in, wq, bq, wk, bk, wv, bv, wo, bo, g, b, mask):
        Bq, Sq_, _ = q_in.shape
        Skv = kv_in.shape[1]
        q = q_in @ wq + bq
        k = kv_in @ wk + bk
        v = kv_in @ wv + bv
        qh = q.reshape(Bq, Sq_, H, D_K).transpose(0, 2, 1, 3)
        kh = k.reshape(Bq, Skv, H, D_K).transpose(0, 2, 1, 3)
        vh = v.reshape(Bq, Skv, H, D_V).transpose(0, 2, 1, 3)
        s = jnp.einsum('bhqd,bhkd->bhqk', qh, kh) / math.sqrt(D_K)
        s = jnp.where(mask[:, None, :, :] > 0.0, NEG_INF, s)
        a = jax.nn.softmax(s, axis=-1)
        o = jnp.einsum('bhqk,bhkd->bhqd', a, vh)
        o = o.transpose(0, 2, 1, 3).reshape(Bq, Sq_, H * D_V)
        o = o @ wo + bo
        return _layer_norm(q_in + o, g, b)

    sa = mha(x, x, p["sa_wq"], p["sa_bq"], p["sa_wk"], p["sa_bk"],
             p["sa_wv"], p["sa_bv"], p["sa_wo"], p["sa_bo"],
             p["sa_ln_g"], p["sa_ln_b"], mask_self_att) * mask_pad
    ca = mha(sa, enc_out, p["ca_wq"], p["ca_bq"], p["ca_wk"], p["ca_bk"],
             p["ca_wv"], p["ca_bv"], p["ca_wo"], p["ca_bo"],
             p["ca_ln_g"], p["ca_ln_b"], mask_enc_att) * mask_pad
    h1 = jnp.maximum(ca @ p["w1"] + p["b1"], 0.0)
    o = h1 @ p["w2"] + p["b2"]
    return _layer_norm(ca + o, p["ff_ln_g"], p["ff_ln_b"]) * mask_pad


# ---------------------------------------------------------------------------
if __name__ == "__main__":
    B, Sq, Sk = 2, 8, 10
    key = jax.random.PRNGKey(0)
    kx, ke, kp = jax.random.split(key, 3)

    x = jax.random.normal(kx, (B, Sq, D_MODEL), jnp.float32)
    enc_out = jax.random.normal(ke, (B, Sk, D_MODEL), jnp.float32)

    # padding mask: batch 0 keeps first 6 tokens, batch 1 keeps all 8
    valid_q = jnp.array([6, 8])
    mask_pad = (jnp.arange(Sq)[None, :] < valid_q[:, None]
                ).astype(jnp.float32)[..., None]                     # (B,Sq,1)

    # causal self-attention mask: 1 where key index > query index (masked)
    causal = (jnp.arange(Sq)[None, :] > jnp.arange(Sq)[:, None]).astype(jnp.float32)
    mask_self_att = jnp.broadcast_to(causal, (B, Sq, Sq))

    # encoder-attention mask: batch 0 masks last 2 enc positions, batch 1 none
    valid_k = jnp.array([8, 10])
    enc_mask = (jnp.arange(Sk)[None, :] >= valid_k[:, None]).astype(jnp.float32)
    mask_enc_att = jnp.broadcast_to(enc_mask[:, None, :], (B, Sq, Sk))

    raw = make_params(kp)
    packed = pack_params(raw)

    out = decoder_layer(x, enc_out, mask_pad, mask_self_att, mask_enc_att, packed)
    out = jax.block_until_ready(out)

    ref = reference_forward(x, enc_out, mask_pad, mask_self_att, mask_enc_att, raw)
    ref = jax.block_until_ready(ref)

    assert out.shape == (B, Sq, D_MODEL)
    assert bool(jnp.all(jnp.isfinite(out)))
    err = float(jnp.max(jnp.abs(out - ref)))
    assert bool(jnp.allclose(out, ref, rtol=1e-4, atol=1e-4)), f"max |err| = {err}"
    print("KERNEL_OK")
</pallas_src>

<mosaic_0001>
module attributes {stable_mosaic.version = 11 : i64} {
  func.func @decoder_layer_kernel(%arg0: memref<2x8x32xf32, #tpu.memory_space<vmem>>, %arg1: memref<2x10x32xf32, #tpu.memory_space<vmem>>, %arg2: memref<2x8x1xf32, #tpu.memory_space<vmem>>, %arg3: memref<2x8x8xf32, #tpu.memory_space<vmem>>, %arg4: memref<2x8x10xf32, #tpu.memory_space<vmem>>, %arg5: memref<32x384xf32, #tpu.memory_space<vmem>>, %arg6: memref<8x128xf32, #tpu.memory_space<vmem>>, %arg7: memref<2x8x32xf32, #tpu.memory_space<vmem>>) attributes {dimension_semantics = [], scalar_prefetch = 0 : i64, scratch_operands = 0 : i64, tpu.core_type = #tpu.core_type<tc>} {
    %c0 = arith.constant 0 : index
    %c0_0 = arith.constant 0 : index
    %c0_1 = arith.constant 0 : index
    %0 = vector.load %arg0[%c0, %c0_0, %c0_1] : memref<2x8x32xf32, #tpu.memory_space<vmem>>, vector<2x8x32xf32>
    %1 = vector.shape_cast %0 : vector<2x8x32xf32> to vector<16x32xf32>
    %c0_2 = arith.constant 0 : index
    %c0_3 = arith.constant 0 : index
    %c0_4 = arith.constant 0 : index
    %2 = vector.load %arg1[%c0_2, %c0_3, %c0_4] : memref<2x10x32xf32, #tpu.memory_space<vmem>>, vector<2x10x32xf32>
    %3 = vector.shape_cast %2 : vector<2x10x32xf32> to vector<20x32xf32>
    %c0_5 = arith.constant 0 : index
    %c0_6 = arith.constant 0 : index
    %c0_7 = arith.constant 0 : index
    %4 = vector.load %arg2[%c0_5, %c0_6, %c0_7] : memref<2x8x1xf32, #tpu.memory_space<vmem>>, vector<2x8x1xf32>
    %5 = vector.shape_cast %4 : vector<2x8x1xf32> to vector<16x1xf32>
    %c0_8 = arith.constant 0 : index
    %c0_9 = arith.constant 0 : index
    %c0_10 = arith.constant 0 : index
    %6 = vector.load %arg3[%c0_8, %c0_9, %c0_10] : memref<2x8x8xf32, #tpu.memory_space<vmem>>, vector<2x8x8xf32>
    %c0_11 = arith.constant 0 : index
    %c0_12 = arith.constant 0 : index
    %c0_13 = arith.constant 0 : index
    %7 = vector.load %arg4[%c0_11, %c0_12, %c0_13] : memref<2x8x10xf32, #tpu.memory_space<vmem>>, vector<2x8x10xf32>
    %c0_14 = arith.constant 0 : index
    %c0_15 = arith.constant 0 : index
    %8 = vector.load %arg5[%c0_14, %c0_15] : memref<32x384xf32, #tpu.memory_space<vmem>>, vector<32x384xf32>
    %c0_16 = arith.constant 0 : index
    %c0_17 = arith.constant 0 : index
    %9 = vector.load %arg6[%c0_16, %c0_17] : memref<8x128xf32, #tpu.memory_space<vmem>>, vector<8x128xf32>
    %10 = vector.extract_strided_slice %8 {offsets = [0, 0], sizes = [32, 96], strides = [1, 1]} : vector<32x384xf32> to vector<32x96xf32>
    %11 = vector.extract_strided_slice %9 {offsets = [0, 0], sizes = [1, 96], strides = [1, 1]} : vector<8x128xf32> to vector<1x96xf32>
    %cst = arith.constant dense<0.000000e+00> : vector<16x96xf32>
    %12 = tpu.matmul %1, %10, %cst {dimension_numbers = #tpu.dot_dimension_numbers<[1], [0], [0], [1], [0, 0, 1, 1], [], []>} : vector<16x32xf32>, vector<32x96xf32>, vector<16x96xf32> -> vector<16x96xf32>
    %13 = vector.broadcast %11 : vector<1x96xf32> to vector<16x96xf32>
    %14 = arith.addf %12, %13 : vector<16x96xf32>
    %15 = vector.extract_strided_slice %14 {offsets = [0, 0], sizes = [16, 32], strides = [1, 1]} : vector<16x96xf32> to vector<16x32xf32>
    %16 = vector.shape_cast %15 : vector<16x32xf32> to vector<2x8x32xf32>
    %17 = vector.extract_strided_slice %14 {offsets = [0, 32], sizes = [16, 32], strides = [1, 1]} : vector<16x96xf32> to vector<16x32xf32>
    %18 = vector.shape_cast %17 : vector<16x32xf32> to vector<2x8x32xf32>
    %19 = vector.extract_strided_slice %14 {offsets = [0, 64], sizes = [16, 32], strides = [1, 1]} : vector<16x96xf32> to vector<16x32xf32>
    %20 = vector.shape_cast %19 : vector<16x32xf32> to vector<2x8x32xf32>
    %21 = vector.extract_strided_slice %8 {offsets = [0, 192], sizes = [32, 32], strides = [1, 1]} : vector<32x384xf32> to vector<32x32xf32>
    %22 = vector.extract_strided_slice %9 {offsets = [2, 0], sizes = [1, 32], strides = [1, 1]} : vector<8x128xf32> to vector<1x32xf32>
    %23 = vector.extract_strided_slice %16 {offsets = [0, 0, 0], sizes = [2, 8, 8], strides = [1, 1, 1]} : vector<2x8x32xf32> to vector<2x8x8xf32>
    %24 = vector.extract_strided_slice %18 {offsets = [0, 0, 0], sizes = [2, 8, 8], strides = [1, 1, 1]} : vector<2x8x32xf32> to vector<2x8x8xf32>
    %25 = vector.extract_strided_slice %20 {offsets = [0, 0, 0], sizes = [2, 8, 8], strides = [1, 1, 1]} : vector<2x8x32xf32> to vector<2x8x8xf32>
    "tpu.trace_start"() <{level = 10 : i32, message = "bqd,bkd->bqk"}> : () -> ()
    %cst_18 = arith.constant dense<0.000000e+00> : vector<2x8x8xf32>
    %26 = tpu.matmul %23, %24, %cst_18 {dimension_numbers = #tpu.dot_dimension_numbers<[2], [2], [1], [1], [0, 0, 0, 1, 1, 1], [0], [0]>} : vector<2x8x8xf32>, vector<2x8x8xf32>, vector<2x8x8xf32> -> vector<2x8x8xf32>
    "tpu.trace_stop"() : () -> ()
    %cst_19 = arith.constant 0.353553385 : f32
    %27 = vector.broadcast %cst_19 : f32 to vector<2x8x8xf32>
    %28 = arith.mulf %26, %27 : vector<2x8x8xf32>
    %29 = arith.addf %28, %6 : vector<2x8x8xf32>
    %30 = math.exp %29 : vector<2x8x8xf32>
    %cst_20 = arith.constant dense<0.000000e+00> : vector<2x8xf32>
    %31 = vector.multi_reduction <add>, %30, %cst_20 [2] : vector<2x8x8xf32> to vector<2x8xf32>
    %32 = vector.shape_cast %31 : vector<2x8xf32> to vector<2x8x1xf32>
    %33 = vector.broadcast %32 : vector<2x8x1xf32> to vector<2x8x8xf32>
    %34 = arith.divf %30, %33 : vector<2x8x8xf32>
    "tpu.trace_start"() <{level = 10 : i32, message = "bqk,bkd->bqd"}> : () -> ()
    %cst_21 = arith.constant dense<0.000000e+00> : vector<2x8x8xf32>
    %35 = tpu.matmul %34, %25, %cst_21 {dimension_numbers = #tpu.dot_dimension_numbers<[2], [1], [1], [2], [0, 0, 0, 1, 1, 2], [0], [0]>} : vector<2x8x8xf32>, vector<2x8x8xf32>, vector<2x8x8xf32> -> vector<2x8x8xf32>
    "tpu.trace_stop"() : () -> ()
    %36 = vector.extract_strided_slice %16 {offsets = [0, 0, 8], sizes = [2, 8, 8], strides = [1, 1, 1]} : vector<2x8x32xf32> to vector<2x8x8xf32>
    %37 = vector.extract_strided_slice %18 {offsets = [0, 0, 8], sizes = [2, 8, 8], strides = [1, 1, 1]} : vector<2x8x32xf32> to vector<2x8x8xf32>
    %38 = vector.extract_strided_slice %20 {offsets = [0, 0, 8], sizes = [2, 8, 8], strides = [1, 1, 1]} : vector<2x8x32xf32> to vector<2x8x8xf32>
    "tpu.trace_start"() <{level = 10 : i32, message = "bqd,bkd->bqk"}> : () -> ()
    %cst_22 = arith.constant dense<0.000000e+00> : vector<2x8x8xf32>
    %39 = tpu.matmul %36, %37, %cst_22 {dimension_numbers = #tpu.dot_dimension_numbers<[2], [2], [1], [1], [0, 0, 0, 1, 1, 1], [0], [0]>} : vector<2x8x8xf32>, vector<2x8x8xf32>, vector<2x8x8xf32> -> vector<2x8x8xf32>
    "tpu.trace_stop"() : () -> ()
    %cst_23 = arith.constant 0.353553385 : f32
    %40 = vector.broadcast %cst_23 : f32 to vector<2x8x8xf32>
    %41 = arith.mulf %39, %40 : vector<2x8x8xf32>
    %42 = arith.addf %41, %6 : vector<2x8x8xf32>
    %43 = math.exp %42 : vector<2x8x8xf32>
    %cst_24 = arith.constant dense<0.000000e+00> : vector<2x8xf32>
    %44 = vector.multi_reduction <add>, %43, %cst_24 [2] : vector<2x8x8xf32> to vector<2x8xf32>
    %45 = vector.shape_cast %44 : vector<2x8xf32> to vector<2x8x1xf32>
    %46 = vector.broadcast %45 : vector<2x8x1xf32> to vector<2x8x8xf32>
    %47 = arith.divf %43, %46 : vector<2x8x8xf32>
    "tpu.trace_start"() <{level = 10 : i32, message = "bqk,bkd->bqd"}> : () -> ()
    %cst_25 = arith.constant dense<0.000000e+00> : vector<2x8x8xf32>
    %48 = tpu.matmul %47, %38, %cst_25 {dimension_numbers = #tpu.dot_dimension_numbers<[2], [1], [1], [2], [0, 0, 0, 1, 1, 2], [0], [0]>} : vector<2x8x8xf32>, vector<2x8x8xf32>, vector<2x8x8xf32> -> vector<2x8x8xf32>
    "tpu.trace_stop"() : () -> ()
    %49 = vector.extract_strided_slice %16 {offsets = [0, 0, 16], sizes = [2, 8, 8], strides = [1, 1, 1]} : vector<2x8x32xf32> to vector<2x8x8xf32>
    %50 = vector.extract_strided_slice %18 {offsets = [0, 0, 16], sizes = [2, 8, 8], strides = [1, 1, 1]} : vector<2x8x32xf32> to vector<2x8x8xf32>
    %51 = vector.extract_strided_slice %20 {offsets = [0, 0, 16], sizes = [2, 8, 8], strides = [1, 1, 1]} : vector<2x8x32xf32> to vector<2x8x8xf32>
    "tpu.trace_start"() <{level = 10 : i32, message = "bqd,bkd->bqk"}> : () -> ()
    %cst_26 = arith.constant dense<0.000000e+00> : vector<2x8x8xf32>
    %52 = tpu.matmul %49, %50, %cst_26 {dimension_numbers = #tpu.dot_dimension_numbers<[2], [2], [1], [1], [0, 0, 0, 1, 1, 1], [0], [0]>} : vector<2x8x8xf32>, vector<2x8x8xf32>, vector<2x8x8xf32> -> vector<2x8x8xf32>
    "tpu.trace_stop"() : () -> ()
    %cst_27 = arith.constant 0.353553385 : f32
    %53 = vector.broadcast %cst_27 : f32 to vector<2x8x8xf32>
    %54 = arith.mulf %52, %53 : vector<2x8x8xf32>
    %55 = arith.addf %54, %6 : vector<2x8x8xf32>
    %56 = math.exp %55 : vector<2x8x8xf32>
    %cst_28 = arith.constant dense<0.000000e+00> : vector<2x8xf32>
    %57 = vector.multi_reduction <add>, %56, %cst_28 [2] : vector<2x8x8xf32> to vector<2x8xf32>
    %58 = vector.shape_cast %57 : vector<2x8xf32> to vector<2x8x1xf32>
    %59 = vector.broadcast %58 : vector<2x8x1xf32> to vector<2x8x8xf32>
    %60 = arith.divf %56, %59 : vector<2x8x8xf32>
    "tpu.trace_start"() <{level = 10 : i32, message = "bqk,bkd->bqd"}> : () -> ()
    %cst_29 = arith.constant dense<0.000000e+00> : vector<2x8x8xf32>
    %61 = tpu.matmul %60, %51, %cst_29 {dimension_numbers = #tpu.dot_dimension_numbers<[2], [1], [1], [2], [0, 0, 0, 1, 1, 2], [0], [0]>} : vector<2x8x8xf32>, vector<2x8x8xf32>, vector<2x8x8xf32> -> vector<2x8x8xf32>
    "tpu.trace_stop"() : () -> ()
    %62 = vector.extract_strided_slice %16 {offsets = [0, 0, 24], sizes = [2, 8, 8], strides = [1, 1, 1]} : vector<2x8x32xf32> to vector<2x8x8xf32>
    %63 = vector.extract_strided_slice %18 {offsets = [0, 0, 24], sizes = [2, 8, 8], strides = [1, 1, 1]} : vector<2x8x32xf32> to vector<2x8x8xf32>
    %64 = vector.extract_strided_slice %20 {offsets = [0, 0, 24], sizes = [2, 8, 8], strides = [1, 1, 1]} : vector<2x8x32xf32> to vector<2x8x8xf32>
    "tpu.trace_start"() <{level = 10 : i32, message = "bqd,bkd->bqk"}> : () -> ()
    %cst_30 = arith.constant dense<0.000000e+00> : vector<2x8x8xf32>
    %65 = tpu.matmul %62, %63, %cst_30 {dimension_numbers = #tpu.dot_dimension_numbers<[2], [2], [1], [1], [0, 0, 0, 1, 1, 1], [0], [0]>} : vector<2x8x8xf32>, vector<2x8x8xf32>, vector<2x8x8xf32> -> vector<2x8x8xf32>
    "tpu.trace_stop"() : () -> ()
    %cst_31 = arith.constant 0.353553385 : f32
    %66 = vector.broadcast %cst_31 : f32 to vector<2x8x8xf32>
    %67 = arith.mulf %65, %66 : vector<2x8x8xf32>
    %68 = arith.addf %67, %6 : vector<2x8x8xf32>
    %69 = math.exp %68 : vector<2x8x8xf32>
    %cst_32 = arith.constant dense<0.000000e+00> : vector<2x8xf32>
    %70 = vector.multi_reduction <add>, %69, %cst_32 [2] : vector<2x8x8xf32> to vector<2x8xf32>
    %71 = vector.shape_cast %70 : vector<2x8xf32> to vector<2x8x1xf32>
    %72 = vector.broadcast %71 : vector<2x8x1xf32> to vector<2x8x8xf32>
    %73 = arith.divf %69, %72 : vector<2x8x8xf32>
    "tpu.trace_start"() <{level = 10 : i32, message = "bqk,bkd->bqd"}> : () -> ()
    %cst_33 = arith.constant dense<0.000000e+00> : vector<2x8x8xf32>
    %74 = tpu.matmul %73, %64, %cst_33 {dimension_numbers = #tpu.dot_dimension_numbers<[2], [1], [1], [2], [0, 0, 0, 1, 1, 2], [0], [0]>} : vector<2x8x8xf32>, vector<2x8x8xf32>, vector<2x8x8xf32> -> vector<2x8x8xf32>
    "tpu.trace_stop"() : () -> ()
    %75 = tpu.concatenate %35, %48, %61, %74 in 2 : vector<2x8x8xf32>, vector<2x8x8xf32>, vector<2x8x8xf32>, vector<2x8x8xf32> -> vector<2x8x32xf32>
    %76 = vector.shape_cast %75 : vector<2x8x32xf32> to vector<16x32xf32>
    %cst_34 = arith.constant dense<0.000000e+00> : vector<16x32xf32>
    %77 = tpu.matmul %76, %21, %cst_34 {dimension_numbers = #tpu.dot_dimension_numbers<[1], [0], [0], [1], [0, 0, 1, 1], [], []>} : vector<16x32xf32>, vector<32x32xf32>, vector<16x32xf32> -> vector<16x32xf32>
    %78 = vector.broadcast %22 : vector<1x32xf32> to vector<16x32xf32>
    %79 = arith.addf %77, %78 : vector<16x32xf32>
    %80 = vector.extract_strided_slice %9 {offsets = [4, 0], sizes = [1, 32], strides = [1, 1]} : vector<8x128xf32> to vector<1x32xf32>
    %81 = vector.extract_strided_slice %9 {offsets = [4, 32], sizes = [1, 32], strides = [1, 1]} : vector<8x128xf32> to vector<1x32xf32>
    %82 = arith.addf %1, %79 : vector<16x32xf32>
    %cst_35 = arith.constant dense<0.000000e+00> : vector<16xf32>
    %83 = vector.multi_reduction <add>, %82, %cst_35 [1] : vector<16x32xf32> to vector<16xf32>
    %84 = vector.shape_cast %83 : vector<16xf32> to vector<16x1xf32>
    %cst_36 = arith.constant 3.200000e+01 : f32
    %85 = vector.broadcast %cst_36 : f32 to vector<16x1xf32>
    %86 = arith.divf %84, %85 : vector<16x1xf32>
    %87 = vector.broadcast %86 : vector<16x1xf32> to vector<16x32xf32>
    %88 = arith.subf %82, %87 : vector<16x32xf32>
    %89 = arith.mulf %88, %88 : vector<16x32xf32>
    %cst_37 = arith.constant dense<0.000000e+00> : vector<16xf32>
    %90 = vector.multi_reduction <add>, %89, %cst_37 [1] : vector<16x32xf32> to vector<16xf32>
    %91 = vector.shape_cast %90 : vector<16xf32> to vector<16x1xf32>
    %cst_38 = arith.constant 3.200000e+01 : f32
    %92 = vector.broadcast %cst_38 : f32 to vector<16x1xf32>
    %93 = arith.divf %91, %92 : vector<16x1xf32>
    %94 = vector.broadcast %86 : vector<16x1xf32> to vector<16x32xf32>
    %95 = arith.subf %82, %94 : vector<16x32xf32>
    %cst_39 = arith.constant 9.99999974E-6 : f32
    %96 = vector.broadcast %cst_39 : f32 to vector<16x1xf32>
    %97 = arith.addf %93, %96 : vector<16x1xf32>
    %98 = math.rsqrt %97 : vector<16x1xf32>
    %99 = vector.broadcast %98 : vector<16x1xf32> to vector<16x32xf32>
    %100 = arith.mulf %95, %99 : vector<16x32xf32>
    %101 = vector.broadcast %80 : vector<1x32xf32> to vector<16x32xf32>
    %102 = arith.mulf %100, %101 : vector<16x32xf32>
    %103 = vector.broadcast %81 : vector<1x32xf32> to vector<16x32xf32>
    %104 = arith.addf %102, %103 : vector<16x32xf32>
    %105 = vector.broadcast %5 : vector<16x1xf32> to vector<16x32xf32>
    %106 = arith.mulf %104, %105 : vector<16x32xf32>
    %107 = vector.extract_strided_slice %8 {offsets = [0, 96], sizes = [32, 32], strides = [1, 1]} : vector<32x384xf32> to vector<32x32xf32>
    %108 = vector.extract_strided_slice %9 {offsets = [1, 0], sizes = [1, 32], strides = [1, 1]} : vector<8x128xf32> to vector<1x32xf32>
    %109 = vector.extract_strided_slice %8 {offsets = [0, 128], sizes = [32, 64], strides = [1, 1]} : vector<32x384xf32> to vector<32x64xf32>
    %110 = vector.extract_strided_slice %9 {offsets = [1, 32], sizes = [1, 64], strides = [1, 1]} : vector<8x128xf32> to vector<1x64xf32>
    %cst_40 = arith.constant dense<0.000000e+00> : vector<16x32xf32>
    %111 = tpu.matmul %106, %107, %cst_40 {dimension_numbers = #tpu.dot_dimension_numbers<[1], [0], [0], [1], [0, 0, 1, 1], [], []>} : vector<16x32xf32>, vector<32x32xf32>, vector<16x32xf32> -> vector<16x32xf32>
    %112 = vector.broadcast %108 : vector<1x32xf32> to vector<16x32xf32>
    %113 = arith.addf %111, %112 : vector<16x32xf32>
    %cst_41 = arith.constant dense<0.000000e+00> : vector<20x64xf32>
    %114 = tpu.matmul %3, %109, %cst_41 {dimension_numbers = #tpu.dot_dimension_numbers<[1], [0], [0], [1], [0, 0, 1, 1], [], []>} : vector<20x32xf32>, vector<32x64xf32>, vector<20x64xf32> -> vector<20x64xf32>
    %115 = vector.broadcast %110 : vector<1x64xf32> to vector<20x64xf32>
    %116 = arith.addf %114, %115 : vector<20x64xf32>
    %117 = vector.shape_cast %113 : vector<16x32xf32> to vector<2x8x32xf32>
    %118 = vector.extract_strided_slice %116 {offsets = [0, 0], sizes = [20, 32], strides = [1, 1]} : vector<20x64xf32> to vector<20x32xf32>
    %119 = vector.shape_cast %118 : vector<20x32xf32> to vector<2x10x32xf32>
    %120 = vector.extract_strided_slice %116 {offsets = [0, 32], sizes = [20, 32], strides = [1, 1]} : vector<20x64xf32> to vector<20x32xf32>
    %121 = vector.shape_cast %120 : vector<20x32xf32> to vector<2x10x32xf32>
    %122 = vector.extract_strided_slice %8 {offsets = [0, 224], sizes = [32, 32], strides = [1, 1]} : vector<32x384xf32> to vector<32x32xf32>
    %123 = vector.extract_strided_slice %9 {offsets = [2, 32], sizes = [1, 32], strides = [1, 1]} : vector<8x128xf32> to vector<1x32xf32>
    %124 = vector.extract_strided_slice %117 {offsets = [0, 0, 0], sizes = [2, 8, 8], strides = [1, 1, 1]} : vector<2x8x32xf32> to vector<2x8x8xf32>
    %125 = vector.extract_strided_slice %119 {offsets = [0, 0, 0], sizes = [2, 10, 8], strides = [1, 1, 1]} : vector<2x10x32xf32> to vector<2x10x8xf32>
    %126 = vector.extract_strided_slice %121 {offsets = [0, 0, 0], sizes = [2, 10, 8], strides = [1, 1, 1]} : vector<2x10x32xf32> to vector<2x10x8xf32>
    "tpu.trace_start"() <{level = 10 : i32, message = "bqd,bkd->bqk"}> : () -> ()
    %cst_42 = arith.constant dense<0.000000e+00> : vector<2x8x10xf32>
    %127 = tpu.matmul %124, %125, %cst_42 {dimension_numbers = #tpu.dot_dimension_numbers<[2], [2], [1], [1], [0, 0, 0, 1, 1, 1], [0], [0]>} : vector<2x8x8xf32>, vector<2x10x8xf32>, vector<2x8x10xf32> -> vector<2x8x10xf32>
    "tpu.trace_stop"() : () -> ()
    %cst_43 = arith.constant 0.353553385 : f32
    %128 = vector.broadcast %cst_43 : f32 to vector<2x8x10xf32>
    %129 = arith.mulf %127, %128 : vector<2x8x10xf32>
    %130 = arith.addf %129, %7 : vector<2x8x10xf32>
    %131 = math.exp %130 : vector<2x8x10xf32>
    %cst_44 = arith.constant dense<0.000000e+00> : vector<2x8xf32>
    %132 = vector.multi_reduction <add>, %131, %cst_44 [2] : vector<2x8x10xf32> to vector<2x8xf32>
    %133 = vector.shape_cast %132 : vector<2x8xf32> to vector<2x8x1xf32>
    %134 = vector.broadcast %133 : vector<2x8x1xf32> to vector<2x8x10xf32>
    %135 = arith.divf %131, %134 : vector<2x8x10xf32>
    "tpu.trace_start"() <{level = 10 : i32, message = "bqk,bkd->bqd"}> : () -> ()
    %cst_45 = arith.constant dense<0.000000e+00> : vector<2x8x8xf32>
    %136 = tpu.matmul %135, %126, %cst_45 {dimension_numbers = #tpu.dot_dimension_numbers<[2], [1], [1], [2], [0, 0, 0, 1, 1, 2], [0], [0]>} : vector<2x8x10xf32>, vector<2x10x8xf32>, vector<2x8x8xf32> -> vector<2x8x8xf32>
    "tpu.trace_stop"() : () -> ()
    %137 = vector.extract_strided_slice %117 {offsets = [0, 0, 8], sizes = [2, 8, 8], strides = [1, 1, 1]} : vector<2x8x32xf32> to vector<2x8x8xf32>
    %138 = vector.extract_strided_slice %119 {offsets = [0, 0, 8], sizes = [2, 10, 8], strides = [1, 1, 1]} : vector<2x10x32xf32> to vector<2x10x8xf32>
    %139 = vector.extract_strided_slice %121 {offsets = [0, 0, 8], sizes = [2, 10, 8], strides = [1, 1, 1]} : vector<2x10x32xf32> to vector<2x10x8xf32>
    "tpu.trace_start"() <{level = 10 : i32, message = "bqd,bkd->bqk"}> : () -> ()
    %cst_46 = arith.constant dense<0.000000e+00> : vector<2x8x10xf32>
    %140 = tpu.matmul %137, %138, %cst_46 {dimension_numbers = #tpu.dot_dimension_numbers<[2], [2], [1], [1], [0, 0, 0, 1, 1, 1], [0], [0]>} : vector<2x8x8xf32>, vector<2x10x8xf32>, vector<2x8x10xf32> -> vector<2x8x10xf32>
    "tpu.trace_stop"() : () -> ()
    %cst_47 = arith.constant 0.353553385 : f32
    %141 = vector.broadcast %cst_47 : f32 to vector<2x8x10xf32>
    %142 = arith.mulf %140, %141 : vector<2x8x10xf32>
    %143 = arith.addf %142, %7 : vector<2x8x10xf32>
    %144 = math.exp %143 : vector<2x8x10xf32>
    %cst_48 = arith.constant dense<0.000000e+00> : vector<2x8xf32>
    %145 = vector.multi_reduction <add>, %144, %cst_48 [2] : vector<2x8x10xf32> to vector<2x8xf32>
    %146 = vector.shape_cast %145 : vector<2x8xf32> to vector<2x8x1xf32>
    %147 = vector.broadcast %146 : vector<2x8x1xf32> to vector<2x8x10xf32>
    %148 = arith.divf %144, %147 : vector<2x8x10xf32>
    "tpu.trace_start"() <{level = 10 : i32, message = "bqk,bkd->bqd"}> : () -> ()
    %cst_49 = arith.constant dense<0.000000e+00> : vector<2x8x8xf32>
    %149 = tpu.matmul %148, %139, %cst_49 {dimension_numbers = #tpu.dot_dimension_numbers<[2], [1], [1], [2], [0, 0, 0, 1, 1, 2], [0], [0]>} : vector<2x8x10xf32>, vector<2x10x8xf32>, vector<2x8x8xf32> -> vector<2x8x8xf32>
    "tpu.trace_stop"() : () -> ()
    %150 = vector.extract_strided_slice %117 {offsets = [0, 0, 16], sizes = [2, 8, 8], strides = [1, 1, 1]} : vector<2x8x32xf32> to vector<2x8x8xf32>
    %151 = vector.extract_strided_slice %119 {offsets = [0, 0, 16], sizes = [2, 10, 8], strides = [1, 1, 1]} : vector<2x10x32xf32> to vector<2x10x8xf32>
    %152 = vector.extract_strided_slice %121 {offsets = [0, 0, 16], sizes = [2, 10, 8], strides = [1, 1, 1]} : vector<2x10x32xf32> to vector<2x10x8xf32>
    "tpu.trace_start"() <{level = 10 : i32, message = "bqd,bkd->bqk"}> : () -> ()
    %cst_50 = arith.constant dense<0.000000e+00> : vector<2x8x10xf32>
    %153 = tpu.matmul %150, %151, %cst_50 {dimension_numbers = #tpu.dot_dimension_numbers<[2], [2], [1], [1], [0, 0, 0, 1, 1, 1], [0], [0]>} : vector<2x8x8xf32>, vector<2x10x8xf32>, vector<2x8x10xf32> -> vector<2x8x10xf32>
    "tpu.trace_stop"() : () -> ()
    %cst_51 = arith.constant 0.353553385 : f32
    %154 = vector.broadcast %cst_51 : f32 to vector<2x8x10xf32>
    %155 = arith.mulf %153, %154 : vector<2x8x10xf32>
    %156 = arith.addf %155, %7 : vector<2x8x10xf32>
    %157 = math.exp %156 : vector<2x8x10xf32>
    %cst_52 = arith.constant dense<0.000000e+00> : vector<2x8xf32>
    %158 = vector.multi_reduction <add>, %157, %cst_52 [2] : vector<2x8x10xf32> to vector<2x8xf32>
    %159 = vector.shape_cast %158 : vector<2x8xf32> to vector<2x8x1xf32>
    %160 = vector.broadcast %159 : vector<2x8x1xf32> to vector<2x8x10xf32>
    %161 = arith.divf %157, %160 : vector<2x8x10xf32>
    "tpu.trace_start"() <{level = 10 : i32, message = "bqk,bkd->bqd"}> : () -> ()
    %cst_53 = arith.constant dense<0.000000e+00> : vector<2x8x8xf32>
    %162 = tpu.matmul %161, %152, %cst_53 {dimension_numbers = #tpu.dot_dimension_numbers<[2], [1], [1], [2], [0, 0, 0, 1, 1, 2], [0], [0]>} : vector<2x8x10xf32>, vector<2x10x8xf32>, vector<2x8x8xf32> -> vector<2x8x8xf32>
    "tpu.trace_stop"() : () -> ()
    %163 = vector.extract_strided_slice %117 {offsets = [0, 0, 24], sizes = [2, 8, 8], strides = [1, 1, 1]} : vector<2x8x32xf32> to vector<2x8x8xf32>
    %164 = vector.extract_strided_slice %119 {offsets = [0, 0, 24], sizes = [2, 10, 8], strides = [1, 1, 1]} : vector<2x10x32xf32> to vector<2x10x8xf32>
    %165 = vector.extract_strided_slice %121 {offsets = [0, 0, 24], sizes = [2, 10, 8], strides = [1, 1, 1]} : vector<2x10x32xf32> to vector<2x10x8xf32>
    "tpu.trace_start"() <{level = 10 : i32, message = "bqd,bkd->bqk"}> : () -> ()
    %cst_54 = arith.constant dense<0.000000e+00> : vector<2x8x10xf32>
    %166 = tpu.matmul %163, %164, %cst_54 {dimension_numbers = #tpu.dot_dimension_numbers<[2], [2], [1], [1], [0, 0, 0, 1, 1, 1], [0], [0]>} : vector<2x8x8xf32>, vector<2x10x8xf32>, vector<2x8x10xf32> -> vector<2x8x10xf32>
    "tpu.trace_stop"() : () -> ()
    %cst_55 = arith.constant 0.353553385 : f32
    %167 = vector.broadcast %cst_55 : f32 to vector<2x8x10xf32>
    %168 = arith.mulf %166, %167 : vector<2x8x10xf32>
    %169 = arith.addf %168, %7 : vector<2x8x10xf32>
    %170 = math.exp %169 : vector<2x8x10xf32>
    %cst_56 = arith.constant dense<0.000000e+00> : vector<2x8xf32>
    %171 = vector.multi_reduction <add>, %170, %cst_56 [2] : vector<2x8x10xf32> to vector<2x8xf32>
    %172 = vector.shape_cast %171 : vector<2x8xf32> to vector<2x8x1xf32>
    %173 = vector.broadcast %172 : vector<2x8x1xf32> to vector<2x8x10xf32>
    %174 = arith.divf %170, %173 : vector<2x8x10xf32>
    "tpu.trace_start"() <{level = 10 : i32, message = "bqk,bkd->bqd"}> : () -> ()
    %cst_57 = arith.constant dense<0.000000e+00> : vector<2x8x8xf32>
    %175 = tpu.matmul %174, %165, %cst_57 {dimension_numbers = #tpu.dot_dimension_numbers<[2], [1], [1], [2], [0, 0, 0, 1, 1, 2], [0], [0]>} : vector<2x8x10xf32>, vector<2x10x8xf32>, vector<2x8x8xf32> -> vector<2x8x8xf32>
    "tpu.trace_stop"() : () -> ()
    %176 = tpu.concatenate %136, %149, %162, %175 in 2 : vector<2x8x8xf32>, vector<2x8x8xf32>, vector<2x8x8xf32>, vector<2x8x8xf32> -> vector<2x8x32xf32>
    %177 = vector.shape_cast %176 : vector<2x8x32xf32> to vector<16x32xf32>
    %cst_58 = arith.constant dense<0.000000e+00> : vector<16x32xf32>
    %178 = tpu.matmul %177, %122, %cst_58 {dimension_numbers = #tpu.dot_dimension_numbers<[1], [0], [0], [1], [0, 0, 1, 1], [], []>} : vector<16x32xf32>, vector<32x32xf32>, vector<16x32xf32> -> vector<16x32xf32>
    %179 = vector.broadcast %123 : vector<1x32xf32> to vector<16x32xf32>
    %180 = arith.addf %178, %179 : vector<16x32xf32>
    %181 = vector.extract_strided_slice %9 {offsets = [5, 0], sizes = [1, 32], strides = [1, 1]} : vector<8x128xf32> to vector<1x32xf32>
    %182 = vector.extract_strided_slice %9 {offsets = [5, 32], sizes = [1, 32], strides = [1, 1]} : vector<8x128xf32> to vector<1x32xf32>
    %183 = arith.addf %106, %180 : vector<16x32xf32>
    %cst_59 = arith.constant dense<0.000000e+00> : vector<16xf32>
    %184 = vector.multi_reduction <add>, %183, %cst_59 [1] : vector<16x32xf32> to vector<16xf32>
    %185 = vector.shape_cast %184 : vector<16xf32> to vector<16x1xf32>
    %cst_60 = arith.constant 3.200000e+01 : f32
    %186 = vector.broadcast %cst_60 : f32 to vector<16x1xf32>
    %187 = arith.divf %185, %186 : vector<16x1xf32>
    %188 = vector.broadcast %187 : vector<16x1xf32> to vector<16x32xf32>
    %189 = arith.subf %183, %188 : vector<16x32xf32>
    %190 = arith.mulf %189, %189 : vector<16x32xf32>
    %cst_61 = arith.constant dense<0.000000e+00> : vector<16xf32>
    %191 = vector.multi_reduction <add>, %190, %cst_61 [1] : vector<16x32xf32> to vector<16xf32>
    %192 = vector.shape_cast %191 : vector<16xf32> to vector<16x1xf32>
    %cst_62 = arith.constant 3.200000e+01 : f32
    %193 = vector.broadcast %cst_62 : f32 to vector<16x1xf32>
    %194 = arith.divf %192, %193 : vector<16x1xf32>
    %195 = vector.broadcast %187 : vector<16x1xf32> to vector<16x32xf32>
    %196 = arith.subf %183, %195 : vector<16x32xf32>
    %cst_63 = arith.constant 9.99999974E-6 : f32
    %197 = vector.broadcast %cst_63 : f32 to vector<16x1xf32>
    %198 = arith.addf %194, %197 : vector<16x1xf32>
    %199 = math.rsqrt %198 : vector<16x1xf32>
    %200 = vector.broadcast %199 : vector<16x1xf32> to vector<16x32xf32>
    %201 = arith.mulf %196, %200 : vector<16x32xf32>
    %202 = vector.broadcast %181 : vector<1x32xf32> to vector<16x32xf32>
    %203 = arith.mulf %201, %202 : vector<16x32xf32>
    %204 = vector.broadcast %182 : vector<1x32xf32> to vector<16x32xf32>
    %205 = arith.addf %203, %204 : vector<16x32xf32>
    %206 = vector.broadcast %5 : vector<16x1xf32> to vector<16x32xf32>
    %207 = arith.mulf %205, %206 : vector<16x32xf32>
    %208 = vector.extract_strided_slice %8 {offsets = [0, 256], sizes = [32, 64], strides = [1, 1]} : vector<32x384xf32> to vector<32x64xf32>
    %209 = vector.extract_strided_slice %8 {offsets = [0, 320], sizes = [32, 64], strides = [1, 1]} : vector<32x384xf32> to vector<32x64xf32>
    %210 = vector.extract_strided_slice %9 {offsets = [3, 0], sizes = [1, 64], strides = [1, 1]} : vector<8x128xf32> to vector<1x64xf32>
    %211 = vector.extract_strided_slice %9 {offsets = [3, 64], sizes = [1, 32], strides = [1, 1]} : vector<8x128xf32> to vector<1x32xf32>
    %cst_64 = arith.constant dense<0.000000e+00> : vector<16x64xf32>
    %212 = tpu.matmul %207, %208, %cst_64 {dimension_numbers = #tpu.dot_dimension_numbers<[1], [0], [0], [1], [0, 0, 1, 1], [], []>} : vector<16x32xf32>, vector<32x64xf32>, vector<16x64xf32> -> vector<16x64xf32>
    %213 = vector.broadcast %210 : vector<1x64xf32> to vector<16x64xf32>
    %214 = arith.addf %212, %213 : vector<16x64xf32>
    %cst_65 = arith.constant 0.000000e+00 : f32
    %215 = vector.broadcast %cst_65 : f32 to vector<16x64xf32>
    %216 = arith.maximumf %214, %215 : vector<16x64xf32>
    %cst_66 = arith.constant dense<0.000000e+00> : vector<16x32xf32>
    %217 = tpu.matmul %216, %209, %cst_66 {dimension_numbers = #tpu.dot_dimension_numbers<[1], [1], [0], [0], [0, 0, 1, 0], [], []>} : vector<16x64xf32>, vector<32x64xf32>, vector<16x32xf32> -> vector<16x32xf32>
    %218 = vector.broadcast %211 : vector<1x32xf32> to vector<16x32xf32>
    %219 = arith.addf %217, %218 : vector<16x32xf32>
    %220 = vector.extract_strided_slice %9 {offsets = [6, 0], sizes = [1, 32], strides = [1, 1]} : vector<8x128xf32> to vector<1x32xf32>
    %221 = vector.extract_strided_slice %9 {offsets = [6, 32], sizes = [1, 32], strides = [1, 1]} : vector<8x128xf32> to vector<1x32xf32>
    %222 = arith.addf %207, %219 : vector<16x32xf32>
    %cst_67 = arith.constant dense<0.000000e+00> : vector<16xf32>
    %223 = vector.multi_reduction <add>, %222, %cst_67 [1] : vector<16x32xf32> to vector<16xf32>
    %224 = vector.shape_cast %223 : vector<16xf32> to vector<16x1xf32>
    %cst_68 = arith.constant 3.200000e+01 : f32
    %225 = vector.broadcast %cst_68 : f32 to vector<16x1xf32>
    %226 = arith.divf %224, %225 : vector<16x1xf32>
    %227 = vector.broadcast %226 : vector<16x1xf32> to vector<16x32xf32>
    %228 = arith.subf %222, %227 : vector<16x32xf32>
    %229 = arith.mulf %228, %228 : vector<16x32xf32>
    %cst_69 = arith.constant dense<0.000000e+00> : vector<16xf32>
    %230 = vector.multi_reduction <add>, %229, %cst_69 [1] : vector<16x32xf32> to vector<16xf32>
    %231 = vector.shape_cast %230 : vector<16xf32> to vector<16x1xf32>
    %cst_70 = arith.constant 3.200000e+01 : f32
    %232 = vector.broadcast %cst_70 : f32 to vector<16x1xf32>
    %233 = arith.divf %231, %232 : vector<16x1xf32>
    %234 = vector.broadcast %226 : vector<16x1xf32> to vector<16x32xf32>
    %235 = arith.subf %222, %234 : vector<16x32xf32>
    %cst_71 = arith.constant 9.99999974E-6 : f32
    %236 = vector.broadcast %cst_71 : f32 to vector<16x1xf32>
    %237 = arith.addf %233, %236 : vector<16x1xf32>
    %238 = math.rsqrt %237 : vector<16x1xf32>
    %239 = vector.broadcast %238 : vector<16x1xf32> to vector<16x32xf32>
    %240 = arith.mulf %235, %239 : vector<16x32xf32>
    %241 = vector.broadcast %220 : vector<1x32xf32> to vector<16x32xf32>
    %242 = arith.mulf %240, %241 : vector<16x32xf32>
    %243 = vector.broadcast %221 : vector<1x32xf32> to vector<16x32xf32>
    %244 = arith.addf %242, %243 : vector<16x32xf32>
    %245 = vector.broadcast %5 : vector<16x1xf32> to vector<16x32xf32>
    %246 = arith.mulf %244, %245 : vector<16x32xf32>
    %247 = vector.shape_cast %246 : vector<16x32xf32> to vector<2x8x32xf32>
    %c0_72 = arith.constant 0 : index
    %c0_73 = arith.constant 0 : index
    %c0_74 = arith.constant 0 : index
    %248 = vector.load %arg7[%c0_72, %c0_73, %c0_74] : memref<2x8x32xf32, #tpu.memory_space<vmem>>, vector<2x8x32xf32>
    tpu.vector_store %arg7[%c0_72, %c0_73, %c0_74], %247 {strides = array<i32>} : memref<2x8x32xf32, #tpu.memory_space<vmem>>, vector<2x8x32xf32>,
    return
  }
}

</mosaic_0001>

<bundles_post_ra>
// kernel: tpu_custom_call.1
= control target key start
LH: loop header
LB: loop body
LE: loop exit
PB: predicated region body
PF: predicated region fallthrough
CT: control target
= control target key end

     0   :  { %12 = vsyncpa [#allocation3], 0  ;;  %s5135_s0 = inlined_call_operand.vmem [shape: f32[2,8,32], index: 0, kind: input, shape index: {}]   ;;  %s5136_s1 = inlined_call_operand.vmem [shape: f32[2,10,32], index: 1, kind: input, shape index: {}]   ;;  %s5137_s2 = inlined_call_operand.vmem [shape: f32[2,8,1], index: 2, kind: input, shape index: {}]   ;;  %s5138_s3 = inlined_call_operand.vmem [shape: f32[2,8,8], index: 3, kind: input, shape index: {}]   ;;  %s5139_s4 = inlined_call_operand.vmem [shape: f32[2,8,10], index: 4, kind: input, shape index: {}]   ;;  %s5140_s5 = inlined_call_operand.hbm [shape: f32[32,384], index: 5, kind: input, shape index: {}]   ;;  %s5141_s6 = inlined_call_operand.vmem [shape: f32[8,128], index: 6, kind: input, shape index: {}]   ;;  %s5142_s7 = inlined_call_operand.hbm [shape: f32[2,8,32], index: 7, kind: output, shape index: {}]  }
   0x1   :  { %13 = vsyncpa [#allocation4], 0  ;;  %s4433_s24 = smov [#allocation2]  }
   0x2   :  { %s29_s25 = sshll.u32 %s4433_s24, 4  ;;  %s30_s25 = int_to_ptr.vmem [resolvable:$true] %s29_s25 }
   0x3   :  { %s4397_s26 = scalar_lea.vmem %s30_s25, 1536  ;;  %p4402_p1 = scmp.lt.s32.totalorder %s30_s25, %s30_s25 }
   0x4   :  { %p4398_p0 = scmp.ne.s32.totalorder %s30_s25, %s4397_s26  ;;  %p4403_p2 = scmp.lt.s32.totalorder %s4397_s26, %s4397_s26 }
   0x6   :  { %p4404_p3 = por %p4403_p2, %p4402_p1 }
   0x8   :  { %p4405_p4 = pnand %p4404_p3, %p4398_p0 }
   0xa   :  { %4408 = shalt.err (!%p4405_p4)
}
   0xb   :  { %s4434_s27 = smov 384   ;;  %s4435_s28 = smov 24  }
   0xc   :  { %35 = dma.hbm_to_vmem [thread:$0]  %s5140_s5, 1536, %s30_s25, [#allocation3], %s4434_s27, %s4434_s27, %s4435_s28  }
   0xd   :  { %4429 = dma.done.wait [#allocation3], 1536  }
   0xe   :  { %4430 = vsyncadd [#allocation3], 4294965760  ;;  %vm122_vm0 = vcmask 261120   ;;  %v4500_v0 = vld [vmem:[#allocation2 + $0x48] sm:$0xff]  ;;  %v4502_v1 = vld [vmem:[#allocation2 + $0x30] sm:$0xff]  ;;  %v4436_v6 = vmov 0.0   ;;  %v55_v7 = vlaneseq }
   0xf   :  { %4010 = vmatprep.subr.mxu1 %v4500_v0  ;;  %v4508_v2 = vld [vmem:[%s5135_s0] sm:$0xff]  ;;  %v4511_v3 = vld [vmem:[#allocation2 + $0x18] sm:$0xff]  ;;  %v4524_v5 = vld [vmem:[%s5135_s0 + $0x8] sm:$0xff]  ;;  %4031 = vmatprep.subr.mxu0 %v4436_v6  ;;  %vm4437_vm1 = vmmov 0   ;;  %s4438_s12 = smov 96   ;;  %s4439_s13 = smov 64  }
  0x10   :  { %4011 = vmatpush3.msra.mxu1 %v4500_v0  ;;  %4018 = vmatprep.mubr.msk.f32.mxu1 %vm122_vm0, %v4508_v2  ;;  %v4517_v4 = vld [vmem:[#allocation2] sm:$0xff]  ;;  %v4532_v8 = vshrl.u32 %v55_v7, 7  ;;  %s4440_s14 = smov 88   ;;  %s4441_s15 = smov 120   ;;  %vm207_vm2 = vcmask 64512   ;;  %v4587_v24 = vld [vmem:[%s5138_s3 + $0x8] sm:$0xff] }
  0x11   :  { %4012 = vmatprep.subr.mxu1 %v4502_v1  ;;  %4033 = vmatprep.mubr.msk.f32.mxu0 %vm4437_vm1, %v4436_v6  ;;  %v4542_v10 = vld [vmem:[%s5141_s6] sm:$0xff]  ;;  %s4442_s16 = smov 56   ;;  %s4444_s21 = smov 112   ;;  %vm1533_vm3 = vcmask 130048   ;;  %vm1536_vm4 = vcmask 195584   ;;  %vm2200_vm5 = vcmask 1041408  }
  0x12   :  { %4013 = vmatpush3.msra.mxu1 %v4502_v1  ;;  %v120_v9 = vsub.s32 0, %v4532_v8  ;;  %v4581_v19 = vld [vmem:[%s5138_s3] sm:$0xff]  ;;  %s4443_s3 = smov 80   ;;  %s4445_s22 = smov 48   ;;  %vm2181_vm6 = vcmask 80896   ;;  %vm3651_vm7 = vcmask 523264  }
  0x13   :  { %4014 = vmatprep.subr.mxu1 %v4511_v3  ;;  %s4446_s23 = smov 72   ;;  %s4447_s24 = smov 104  }
  0x14   :  { %4015 = vmatpush3.msra.mxu1 %v4511_v3  ;;  %v121_v12 = vrot.slane %v4542_v10, %v120_v9  ;;  %s4448_s25 = smov 40   ;;  %s4449_s26 = smov 8  }
  0x15   :  { %4016 = vmatprep.subr.mxu1 %v4517_v4  ;;  %s4450_s27 = smov 16  }
  0x16   :  { %4017 = vmatpush3.msra.mxu1 %v4517_v4 }
  0x17   :  { %4019 = vmatmul.mubr.msk.f32.vlgmr.msra.gmra.mxu1 %vm122_vm0, %v4524_v5  ;;  %4021 = vmatprep.subr.mxu1 %v4436_v6 }
  0x18   :  { %4023 = vmatprep.mubr.msk.f32.mxu1 %vm4437_vm1, %v4436_v6 }
  0xd7   :  { %v4020_v11 = vpop.f32.mrf.mxu1 }
  0xd8   :  { %v4549_v15 = vadd.f32 %v4020_v11, %v121_v12 }
  0xd9   :  { %v195_v13 = vpop.f32.mrf.mxu1 }
  0xda   :  { %v4545_v14 = vadd.f32 %v195_v13, %v121_v12 }
  0xdc   :  { %205 = vrot.lane.b32.xlu0 %v4545_v14, %s4438_s12 }
  0xe0   :  { %283 = vrot.lane.b32.xlu0 %v4549_v15, %s4438_s12 }
  0xe4   :  { %377 = vrot.lane.b32.xlu0 %v4545_v14, %s4439_s13 }
  0xe8   :  { %531 = vrot.lane.b32.xlu0 %v4545_v14, %s4440_s14 }
  0xec   :  { %609 = vrot.lane.b32.xlu0 %v4549_v15, %s4440_s14 }
  0xf0   :  { %529 = vrot.lane.b32.xlu0 %v4545_v14, %s4441_s15 }
  0xf4   :  { %607 = vrot.lane.b32.xlu0 %v4549_v15, %s4441_s15 }
  0xf8   :  { %703 = vrot.lane.b32.xlu0 %v4545_v14, %s4442_s16 }
 0x14e   :  { %v206_v16 = vpop.permute.xlu0 %205 }
 0x14f   :  { %4022 = vmatpush3.xpose.msk.msra.mxu1 %vm207_vm2, %v206_v16 }
 0x150   :  { %4026 = vmatprep.subr.mxu1 %v4436_v6 }
 0x152   :  { %4024 = vmatmul.mubr.msk.f32.vlgmr.msra.gmra.mxu1 %vm207_vm2, %v4545_v14  ;;  %v284_v17 = vpop.permute.xlu0 %283 }
 0x153   :  { %4027 = vmatpush3.xpose.msk.msra.mxu1 %vm207_vm2, %v284_v17  ;;  %4028 = vmatprep.mubr.msk.f32.mxu1 %vm4437_vm1, %v4436_v6 }
 0x154   :  { %4036 = vmatprep.subr.mxu1 %v4436_v6 }
 0x156   :  { %4029 = vmatmul.mubr.msk.f32.vlgmr.msra.gmra.mxu1 %vm207_vm2, %v4549_v15  ;;  %v378_v18 = vpop.permute.xlu0 %377 }
 0x157   :  { %4032 = vmatpush3.msra.mxu0 %v378_v18  ;;  %4038 = vmatprep.mubr.msk.f32.mxu1 %vm4437_vm1, %v4436_v6 }
 0x158   :  { %4041 = vmatprep.subr.mxu0 %v4436_v6 }
 0x15a   :  { %v532_v35 = vpop.permute.xlu0 %531 }
 0x15e   :  { %v610_v37 = vpop.permute.xlu0 %609 }
 0x162   :  { %v530_v40 = vpop.permute.xlu0 %529 }
 0x166   :  { %v608_v42 = vpop.permute.xlu0 %607 }
 0x16a   :  { %v704_v46 = vpop.permute.xlu0 %703 }
 0x212   :  { %v278_v20 = vpop.f32.mrf.mxu1 }
 0x213   :  { %v359_v21 = vmul.f32 0.35355338, %v278_v20 }
 0x214   :  { %v4025_v22 = vpop.f32.mrf.mxu1 }
 0x215   :  { %v361_v23 = vadd.f32 %v359_v21, %v4581_v19 }
 0x216   :  { %v355_v25 = vpop.f32.mrf.mxu1 }
 0x217   :  { %v363_v26 = vmul.f32 1.442695, %v361_v23  ;;  %v360_v27 = vmul.f32 0.35355338, %v355_v25 }
 0x218   :  { %v4030_v28 = vpop.f32.mrf.mxu1 }
 0x219   :  { %4312 = vpow2.f32 %v363_v26  ;;  %v362_v29 = vadd.f32 %v360_v27, %v4587_v24 }
 0x21b   :  { %v365_v30 = vmul.f32 1.442695, %v362_v29 }
 0x21d   :  { %4314 = vpow2.f32 %v365_v30 }
 0x226   :  { %v4313_v31 = vpop.eup %4312 }
 0x227   :  { %v367_v32 = vsel %vm207_vm2, %v4313_v31, 0.0 }
 0x228   :  { %368 = vadd.xlane.f32.xlu1 %v367_v32 }
 0x22a   :  { %v4315_v33 = vpop.eup %4314 }
 0x22b   :  { %v370_v34 = vsel %vm207_vm2, %v4315_v33, 0.0 }
 0x22c   :  { %371 = vadd.xlane.f32.xlu1 %v370_v34 }
 0x23d   :  { %453 = vrot.lane.b32.xlu1 %v4549_v15, %s4439_s13 }
 0x241   :  { %779 = vrot.lane.b32.xlu1 %v4549_v15, %s4442_s16  ;;  %s4453_s16 = smov 32  }
 0x245   :  { %857 = vrot.lane.b32.xlu1 %v4545_v14, %s4443_s3 }
 0x2b1   :  { %v369_v36 = vpop.xlane.xlu1 %368 }
 0x2b2   :  { %4316 = vrcp.f32 %v369_v36 }
 0x2b5   :  { %v372_v38 = vpop.xlane.xlu1 %371 }
 0x2b6   :  { %4318 = vrcp.f32 %v372_v38 }
 0x2b9   :  { %v454_v39 = vpop.permute.xlu1 %453 }
 0x2ba   :  { %4037 = vmatpush3.msra.mxu1 %v454_v39 }
 0x2bb   :  { %4046 = vmatprep.subr.mxu1 %v4436_v6 }
 0x2bd   :  { %v780_v47 = vpop.permute.xlu1 %779 }
 0x2bf   :  { %v4317_v41 = vpop.eup %4316 }
 0x2c0   :  { %v374_v43 = vmul.f32 %v4317_v41, %v4313_v31 }
 0x2c1   :  { %v858_v11 = vpop.permute.xlu1 %857 }
 0x2c2   :  { %4034 = vmatmul.mubr.msk.f32.vlgmr.msra.gmra.mxu0 %vm207_vm2, %v374_v43 }
 0x2c3   :  { %v4319_v44 = vpop.eup %4318  ;;  %4042 = vmatpush3.xpose.msk.msra.mxu0 %vm207_vm2, %v532_v35  ;;  %4043 = vmatprep.mubr.msk.f32.mxu0 %vm4437_vm1, %v4436_v6 }
 0x2c4   :  { %4051 = vmatprep.subr.mxu0 %v4436_v6  ;;  %v376_v45 = vmul.f32 %v4319_v44, %v4315_v33 }
 0x2c6   :  { %4039 = vmatmul.mubr.msk.f32.vlgmr.msra.gmra.mxu1 %vm207_vm2, %v376_v45  ;;  %4044 = vmatmul.mubr.msk.f32.vlgmr.msra.gmra.mxu0 %vm207_vm2, %v530_v40 }
 0x2c7   :  { %4047 = vmatpush3.xpose.msk.msra.mxu1 %vm207_vm2, %v610_v37  ;;  %4052 = vmatpush3.msra.mxu0 %v704_v46 }
 0x2c8   :  { %4048 = vmatprep.mubr.msk.f32.mxu1 %vm4437_vm1, %v4436_v6  ;;  %4056 = vmatprep.subr.mxu1 %v4436_v6 }
 0x2c9   :  { %4053 = vmatprep.mubr.msk.f32.mxu0 %vm4437_vm1, %v4436_v6  ;;  %4061 = vmatprep.subr.mxu0 %v4436_v6 }
 0x2ca   :  { %4049 = vmatmul.mubr.msk.f32.vlgmr.msra.gmra.mxu1 %vm207_vm2, %v608_v42 }
 0x2cb   :  { %4057 = vmatpush3.msra.mxu1 %v780_v47  ;;  %4058 = vmatprep.mubr.msk.f32.mxu1 %vm4437_vm1, %v4436_v6 }
 0x2cc   :  { %4066 = vmatprep.subr.mxu1 %v4436_v6 }
 0x382   :  { %v4617_v48 = vpop.f32.mrf.mxu0 }
 0x384   :  { %v4035_v49 = vpop.f32.mrf.mxu0 }
 0x386   :  { %v4619_v50 = vpop.f32.mrf.mxu1  ;;  %v603_v51 = vpop.f32.mrf.mxu0 }
 0x387   :  { %v685_v52 = vmul.f32 0.35355338, %v603_v51 }
 0x388   :  { %v4040_v53 = vpop.f32.mrf.mxu1  ;;  %v4045_v54 = vpop.f32.mrf.mxu0 }
 0x389   :  { %v687_v55 = vadd.f32 %v685_v52, %v4581_v19 }
 0x38a   :  { %v681_v56 = vpop.f32.mrf.mxu1 }
 0x38b   :  { %v689_v57 = vmul.f32 1.442695, %v687_v55  ;;  %v686_v58 = vmul.f32 0.35355338, %v681_v56 }
 0x38c   :  { %v4050_v59 = vpop.f32.mrf.mxu1 }
 0x38d   :  { %4320 = vpow2.f32 %v689_v57  ;;  %v688_v60 = vadd.f32 %v686_v58, %v4587_v24 }
 0x38f   :  { %v691_v61 = vmul.f32 1.442695, %v688_v60 }
 0x391   :  { %4322 = vpow2.f32 %v691_v61 }
 0x39a   :  { %v4321_v62 = vpop.eup %4320 }
 0x39b   :  { %v693_v63 = vsel %vm207_vm2, %v4321_v62, 0.0 }
 0x39c   :  { %694 = vadd.xlane.f32.xlu1 %v693_v63 }
 0x39e   :  { %v4323_v7 = vpop.eup %4322 }
 0x39f   :  { %v696_v9 = vsel %vm207_vm2, %v4323_v7, 0.0 }
 0x3a0   :  { %697 = vadd.xlane.f32.xlu0 %v696_v9 }
 0x3ad   :  { %855 = vrot.lane.b32.xlu1 %v4545_v14, %s4444_s21 }
 0x3b1   :  { %1105 = vrot.lane.b32.xlu1 %v4549_v15, %s4445_s22 }
 0x3b5   :  { %1183 = vrot.lane.b32.xlu1 %v4545_v14, %s4446_s23 }
 0x3b6   :  { %935 = vrot.lane.b32.xlu0 %v4549_v15, %s4443_s3 }
 0x3ba   :  { %933 = vrot.lane.b32.xlu0 %v4549_v15, %s4444_s21 }
 0x3be   :  { %1029 = vrot.lane.b32.xlu0 %v4545_v14, %s4445_s22 }
 0x425   :  { %v695_v12 = vpop.xlane.xlu1 %694 }
 0x426   :  { %4324 = vrcp.f32 %v695_v12 }
 0x429   :  { %v698_v13 = vpop.xlane.xlu0 %697  ;;  %v856_v22 = vpop.permute.xlu1 %855 }
 0x42a   :  { %4326 = vrcp.f32 %v698_v13 }
 0x42d   :  { %v936_v16 = vpop.permute.xlu0 %935  ;;  %v1106_v26 = vpop.permute.xlu1 %1105 }
 0x431   :  { %v934_v18 = vpop.permute.xlu0 %933  ;;  %v1184_v45 = vpop.permute.xlu1 %1183 }
 0x433   :  { %v4325_v17 = vpop.eup %4324 }
 0x434   :  { %v700_v20 = vmul.f32 %v4325_v17, %v4321_v62 }
 0x435   :  { %v1030_v25 = vpop.permute.xlu0 %1029 }
 0x436   :  { %4054 = vmatmul.mubr.msk.f32.vlgmr.msra.gmra.mxu0 %vm207_vm2, %v700_v20 }
 0x437   :  { %v4327_v21 = vpop.eup %4326  ;;  %4062 = vmatpush3.xpose.msk.msra.mxu0 %vm207_vm2, %v858_v11  ;;  %4063 = vmatprep.mubr.msk.f32.mxu0 %vm4437_vm1, %v4436_v6 }
 0x438   :  { %4071 = vmatprep.subr.mxu0 %v4436_v6  ;;  %v702_v23 = vmul.f32 %v4327_v21, %v4323_v7 }
 0x43a   :  { %4059 = vmatmul.mubr.msk.f32.vlgmr.msra.gmra.mxu1 %vm207_vm2, %v702_v23  ;;  %4064 = vmatmul.mubr.msk.f32.vlgmr.msra.gmra.mxu0 %vm207_vm2, %v856_v22 }
 0x43b   :  { %4067 = vmatpush3.xpose.msk.msra.mxu1 %vm207_vm2, %v936_v16  ;;  %4072 = vmatpush3.msra.mxu0 %v1030_v25 }
 0x43c   :  { %4068 = vmatprep.mubr.msk.f32.mxu1 %vm4437_vm1, %v4436_v6  ;;  %4076 = vmatprep.subr.mxu1 %v4436_v6 }
 0x43d   :  { %4073 = vmatprep.mubr.msk.f32.mxu0 %vm4437_vm1, %v4436_v6  ;;  %4081 = vmatprep.subr.mxu0 %v4436_v6 }
 0x43e   :  { %4069 = vmatmul.mubr.msk.f32.vlgmr.msra.gmra.mxu1 %vm207_vm2, %v934_v18 }
 0x43f   :  { %4077 = vmatpush3.msra.mxu1 %v1106_v26  ;;  %4078 = vmatprep.mubr.msk.f32.mxu1 %vm4437_vm1, %v4436_v6 }
 0x440   :  { %4086 = vmatprep.subr.mxu1 %v4436_v6 }
 0x4f6   :  { %v4653_v27 = vpop.f32.mrf.mxu0 }
 0x4f8   :  { %v4055_v28 = vpop.f32.mrf.mxu0 }
 0x4fa   :  { %v4655_v29 = vpop.f32.mrf.mxu1  ;;  %v929_v30 = vpop.f32.mrf.mxu0 }
 0x4fb   :  { %v1011_v31 = vmul.f32 0.35355338, %v929_v30 }
 0x4fc   :  { %v4060_v32 = vpop.f32.mrf.mxu1  ;;  %v4065_v33 = vpop.f32.mrf.mxu0 }
 0x4fd   :  { %v1013_v34 = vadd.f32 %v1011_v31, %v4581_v19 }
 0x4fe   :  { %v1007_v35 = vpop.f32.mrf.mxu1 }
 0x4ff   :  { %v1015_v36 = vmul.f32 1.442695, %v1013_v34  ;;  %v1012_v37 = vmul.f32 0.35355338, %v1007_v35  ;;  %v4709_v34 = vld [vmem:[#allocation2 + $0x8] sm:$0xff] }
 0x500   :  { %v4070_v38 = vpop.f32.mrf.mxu1 }
 0x501   :  { %4328 = vpow2.f32 %v1015_v36  ;;  %v1014_v39 = vadd.f32 %v1012_v37, %v4587_v24 }
 0x503   :  { %v1017_v40 = vmul.f32 1.442695, %v1014_v39 }
 0x505   :  { %4330 = vpow2.f32 %v1017_v40 }
 0x50e   :  { %v4329_v41 = vpop.eup %4328 }
 0x50f   :  { %v1019_v42 = vsel %vm207_vm2, %v4329_v41, 0.0 }
 0x510   :  { %1020 = vadd.xlane.f32.xlu1 %v1019_v42 }
 0x512   :  { %v4331_v43 = vpop.eup %4330 }
 0x513   :  { %v1022_v44 = vsel %vm207_vm2, %v4331_v43, 0.0 }
 0x514   :  { %1023 = vadd.xlane.f32.xlu0 %v1022_v44 }
 0x521   :  { %1181 = vrot.lane.b32.xlu1 %v4545_v14, %s4447_s24 }
 0x52a   :  { %1261 = vrot.lane.b32.xlu0 %v4549_v15, %s4446_s23 }
 0x52e   :  { %1259 = vrot.lane.b32.xlu0 %v4549_v15, %s4447_s24 }
 0x599   :  { %v1021_v46 = vpop.xlane.xlu1 %1020 }
 0x59a   :  { %4332 = vrcp.f32 %v1021_v46 }
 0x59d   :  { %v1024_v47 = vpop.xlane.xlu0 %1023  ;;  %v1182_v55 = vpop.permute.xlu1 %1181 }
 0x59e   :  { %4334 = vrcp.f32 %v1024_v47 }
 0x5a1   :  { %v1262_v53 = vpop.permute.xlu0 %1261 }
 0x5a5   :  { %v1260_v56 = vpop.permute.xlu0 %1259 }
 0x5a7   :  { %v4333_v49 = vpop.eup %4332 }
 0x5a8   :  { %v1026_v51 = vmul.f32 %v4333_v49, %v4329_v41 }
 0x5aa   :  { %4074 = vmatmul.mubr.msk.f32.vlgmr.msra.gmra.mxu0 %vm207_vm2, %v1026_v51 }
 0x5ab   :  { %v4335_v52 = vpop.eup %4334  ;;  %4082 = vmatpush3.xpose.msk.msra.mxu0 %vm207_vm2, %v1184_v45  ;;  %4083 = vmatprep.mubr.msk.f32.mxu0 %vm4437_vm1, %v4436_v6 }
 0x5ac   :  { %v1028_v54 = vmul.f32 %v4335_v52, %v4331_v43  ;;  %4091 = vmatprep.subr.mxu0 %v4436_v6 }
 0x5ae   :  { %4079 = vmatmul.mubr.msk.f32.vlgmr.msra.gmra.mxu1 %vm207_vm2, %v1028_v54  ;;  %4084 = vmatmul.mubr.msk.f32.vlgmr.msra.gmra.mxu0 %vm207_vm2, %v1182_v55 }
 0x5af   :  { %4087 = vmatpush3.xpose.msk.msra.mxu1 %vm207_vm2, %v1262_v53  ;;  %4088 = vmatprep.mubr.msk.f32.mxu1 %vm4437_vm1, %v4436_v6 }
 0x5b0   :  { %4096 = vmatprep.subr.mxu1 %v4436_v6  ;;  %4093 = vmatprep.mubr.msk.f32.mxu0 %vm4437_vm1, %v4436_v6 }
 0x5b2   :  { %4089 = vmatmul.mubr.msk.f32.vlgmr.msra.gmra.mxu1 %vm207_vm2, %v1260_v56 }
 0x5b3   :  { %4098 = vmatprep.mubr.msk.f32.mxu1 %vm4437_vm1, %v4436_v6 }
 0x66a   :  { %v1101_v57 = vpop.f32.mrf.mxu0 }
 0x66c   :  { %v4075_v58 = vpop.f32.mrf.mxu0 }
 0x66e   :  { %v1177_v59 = vpop.f32.mrf.mxu1  ;;  %v1255_v60 = vpop.f32.mrf.mxu0 }
 0x66f   :  { %v1337_v61 = vmul.f32 0.35355338, %v1255_v60 }
 0x670   :  { %v4080_v62 = vpop.f32.mrf.mxu1  ;;  %v4085_v63 = vpop.f32.mrf.mxu0 }
 0x671   :  { %v1339_v7 = vadd.f32 %v1337_v61, %v4581_v19  ;;  %v4688_v19 = vld [vmem:[#allocation2 + $0x50] sm:$0xff]  ;;  %v4451_v62 = vmov 0   ;;  %v4452_v63 = vmov 1983009808  }
 0x672   :  { %v1333_v9 = vpop.f32.mrf.mxu1  ;;  %4309 = vset.pattern.permute.xlu1 %v4451_v62  ;;  %4308 = vset.pattern.permute.xlu0 %v4451_v62 }
 0x673   :  { %v1341_v11 = vmul.f32 1.442695, %v1339_v7  ;;  %v1338_v12 = vmul.f32 0.35355338, %v1333_v9  ;;  %v53_v7 = vunpack.c.l.s4 %v4452_v63 }
 0x674   :  { %v4090_v13 = vpop.f32.mrf.mxu1 }
 0x675   :  { %4336 = vpow2.f32 %v1341_v11  ;;  %v1340_v16 = vadd.f32 %v1338_v12, %v4587_v24  ;;  %v4695_v24 = vld [vmem:[#allocation2 + $0x38] sm:$0xff]  ;;  %v54_v9 = vunpack.c.0.s8 %v53_v7 }
 0x677   :  { %v1343_v17 = vmul.f32 1.442695, %v1340_v16  ;;  %v4747_v11 = vsub.s32 %v54_v9, %v4532_v8 }
 0x679   :  { %4338 = vpow2.f32 %v1343_v17 }
 0x682   :  { %v4337_v18 = vpop.eup %4336 }
 0x683   :  { %v1345_v20 = vsel %vm207_vm2, %v4337_v18, 0.0 }
 0x684   :  { %1346 = vadd.xlane.f32.xlu1 %v1345_v20 }
 0x686   :  { %v4339_v21 = vpop.eup %4338 }
 0x687   :  { %v1348_v22 = vsel %vm207_vm2, %v4339_v21, 0.0 }
 0x688   :  { %1349 = vadd.xlane.f32.xlu0 %v1348_v22 }
 0x695   :  { %1431 = vrot.lane.b32.xlu1 %v4549_v15, %s4448_s25  ;;  %v4701_v15 = vld [vmem:[#allocation2 + $0x20] sm:$0xff] }
 0x699   :  { %1553 = vrot.lane.b32.xlu1 %v4688_v19, %s4439_s13 }
 0x69d   :  { %1509 = vrot.lane.b32.xlu1 %v4653_v27, %s4449_s26 }
 0x69e   :  { %1355 = vrot.lane.b32.xlu0 %v4545_v14, %s4448_s25 }
 0x6a1   :  { %1511 = vrot.lane.b32.xlu1 %v4655_v29, %s4449_s26 }
 0x6a2   :  { %1551 = vrot.lane.b32.xlu0 %v4695_v24, %s4439_s13 }
 0x6a5   :  { %1519 = vrot.lane.b32.xlu1 %v1177_v59, %s4450_s27 }
 0x6a6   :  { %1549 = vrot.lane.b32.xlu0 %v4701_v15, %s4439_s13 }
 0x6a9   :  { %1547 = vrot.lane.b32.xlu1 %v4709_v34, %s4439_s13 }
 0x6aa   :  { %1517 = vrot.lane.b32.xlu0 %v1101_v57, %s4450_s27 }
 0x70d   :  { %v1347_v23 = vpop.xlane.xlu1 %1346 }
 0x70e   :  { %4340 = vrcp.f32 %v1347_v23 }
 0x711   :  { %v1432_v14 = vpop.permute.xlu1 %1431  ;;  %v1350_v25 = vpop.xlane.xlu0 %1349 }
 0x712   :  { %4342 = vrcp.f32 %v1350_v25  ;;  %4097 = vmatpush3.msra.mxu1 %v1432_v14 }
 0x715   :  { %v1356_v26 = vpop.permute.xlu0 %1355  ;;  %v1554_v27 = vpop.permute.xlu1 %1553 }
 0x716   :  { %4092 = vmatpush3.msra.mxu0 %v1356_v26 }
 0x717   :  { %4101 = vmatprep.subr.mxu0 %v1554_v27 }
 0x719   :  { %v1552_v29 = vpop.permute.xlu0 %1551  ;;  %v1510_v35 = vpop.permute.xlu1 %1509 }
 0x71a   :  { %v1531_v44 = vsel %vm207_vm2, %v4617_v48, %v1510_v35  ;;  %v1541_v48 = vsub.s32 2, %v4532_v8  ;;  %v45_v35 = vld [vmem:[%s5136_s1 + $0x10] sm:$0xff] }
 0x71b   :  { %v4341_v28 = vpop.eup %4340 }
 0x71c   :  { %v1352_v30 = vmul.f32 %v4341_v28, %v4337_v18 }
 0x71d   :  { %v1550_v33 = vpop.permute.xlu0 %1549  ;;  %v1512_v36 = vpop.permute.xlu1 %1511 }
 0x71e   :  { %4094 = vmatmul.mubr.msk.f32.vlgmr.msra.gmra.mxu0 %vm207_vm2, %v1352_v30  ;;  %v1532_v49 = vsel %vm207_vm2, %v4619_v50, %v1512_v36  ;;  %v4738_v50 = vrot.slane %v4542_v10, %v1541_v48  ;;  %v75_v36 = vcombine.high %v45_v35, %v45_v35  ;;  %v1671_v48 = vsub.s32 4, %v4532_v8 }
 0x71f   :  { %v4343_v31 = vpop.eup %4342  ;;  %4102 = vmatpush3.msra.mxu0 %v1554_v27 }
 0x720   :  { %v1354_v32 = vmul.f32 %v4343_v31, %v4339_v21  ;;  %4103 = vmatprep.subr.mxu0 %v1552_v29 }
 0x721   :  { %4104 = vmatpush3.msra.mxu0 %v1552_v29  ;;  %v1520_v37 = vpop.permute.xlu1 %1519  ;;  %v1518_v43 = vpop.permute.xlu0 %1517 }
 0x722   :  { %4099 = vmatmul.mubr.msk.f32.vlgmr.msra.gmra.mxu1 %vm207_vm2, %v1354_v32  ;;  %4105 = vmatprep.subr.mxu0 %v1550_v33  ;;  %v1534_v45 = vsel %vm1533_vm3, %v1531_v44, %v1518_v43  ;;  %v1535_v51 = vsel %vm1533_vm3, %v1532_v49, %v1520_v37  ;;  %v82_v37 = vrot.slane %v45_v35, %v4747_v11 }
 0x723   :  { %4106 = vmatpush3.msra.mxu0 %v1550_v33 }
 0x725   :  { %v1548_v38 = vpop.permute.xlu1 %1547 }
 0x726   :  { %4107 = vmatprep.subr.mxu0 %v1548_v38 }
 0x727   :  { %4108 = vmatpush3.msra.mxu0 %v1548_v38  ;;  %v89_v38 = vrot.slane %v75_v36, %v4747_v11 }
 0x728   :  { %4123 = vmatprep.subr.mxu0 %v4436_v6 }
 0x7de   :  { %v1427_v39 = vpop.f32.mrf.mxu0 }
 0x7df   :  { %1525 = vrot.lane.b32.xlu0 %v1427_v39, %s4435_s28  ;;  %v90_v39 = vcombine.high %v82_v37, %v82_v37 }
 0x7e0   :  { %v4095_v40 = vpop.f32.mrf.mxu0 }
 0x7e1   :  { %v3802_v40 = vld.sshfl [vmem:[%s5136_s1 + $0x8] sm:$0x3 pattern:$0x76325410] }
 0x7e2   :  { %v1503_v41 = vpop.f32.mrf.mxu1 }
 0x7e3   :  { %1527 = vrot.lane.b32.xlu0 %v1503_v41, %s4435_s28  ;;  %v1811_v41 = vcombine.low %v3802_v40, %v82_v37 }
 0x7e4   :  { %v4100_v42 = vpop.f32.mrf.mxu1 }
 0x7e5   :  { %v1812_v42 = vcombine.low %v90_v39, %v89_v38  ;;  %v1819_v43 = vrot.slane %v1811_v41, %v4747_v11 }
 0x7e7   :  { %v1826_v44 = vrot.slane %v1812_v42, %v4747_v11 }
 0x851   :  { %v1526_v46 = vpop.permute.xlu0 %1525 }
 0x852   :  { %v1537_v47 = vsel %vm1536_vm4, %v1534_v45, %v1526_v46  ;;  %v1827_v45 = vcombine.low %v1819_v43, %v1826_v44  ;;  %v91_v46 = vcombine.high %v89_v38, %v89_v38 }
 0x853   :  { %4109 = vmatprep.mubr.msk.f32.mxu0 %vm122_vm0, %v1537_v47  ;;  %v3803_v47 = vld.sshfl [vmem:[%s5136_s1 + $0x18] sm:$0x3 pattern:$0x76325410] }
 0x854   :  { %v1828_v49 = vcombine.low %v91_v46, %v3803_v47 }
 0x855   :  { %v1528_v52 = vpop.permute.xlu0 %1527 }
 0x856   :  { %v1538_v53 = vsel %vm1536_vm4, %v1535_v51, %v1528_v52  ;;  %v1835_v51 = vrot.slane %v1828_v49, %v4747_v11  ;;  %v100_v52 = vld [vmem:[%s5137_s2 + $0x8] sm:$0xff] }
 0x857   :  { %4110 = vmatmul.mubr.msk.f32.vlgmr.msra.gmra.mxu0 %vm122_vm0, %v1538_v53  ;;  %v99_v53 = vld [vmem:[%s5137_s2] sm:$0xff] }
 0x858   :  { %4124 = vmatpush3.msra.mxu0 %v4688_v19  ;;  %4131 = vmatprep.mubr.msk.f32.mxu0 %vm4437_vm1, %v4436_v6 }
 0x859   :  { %4125 = vmatprep.subr.mxu0 %v4436_v6 }
 0x85a   :  { %4126 = vmatpush3.msra.mxu0 %v4695_v24 }
 0x85b   :  { %4127 = vmatprep.subr.mxu0 %v4436_v6 }
 0x85c   :  { %4128 = vmatpush3.msra.mxu0 %v4701_v15 }
 0x85d   :  { %4129 = vmatprep.subr.mxu0 %v4436_v6 }
 0x85e   :  { %4130 = vmatpush3.msra.mxu0 %v4709_v34 }
 0x85f   :  { %4154 = vmatprep.subr.mxu0 %v4436_v6 }
 0x917   :  { %v4111_v54 = vpop.f32.mrf.mxu0 }
 0x918   :  { %v1637_v55 = vadd.f32 %v4111_v54, %v4738_v50  ;;  %v1695_v54 = vsub.s32 1, %v4532_v8 }
 0x919   :  { %v1631_v56 = vpop.f32.mrf.mxu0 }
 0x91a   :  { %v1632_v57 = vadd.f32 %v1631_v56, %v4738_v50  ;;  %v1641_v58 = vadd.f32 %v1637_v55, %v4524_v5  ;;  %v43_v5 = vld [vmem:[%s5136_s1] sm:$0xff]  ;;  %v4804_v55 = vrot.slane %v4542_v10, %v1695_v54 }
 0x91b   :  { %v51_v12 = vcombine.high %v43_v5, %v43_v5 }
 0x91c   :  { %v1645_v59 = vsel %vm122_vm0, %v1641_v58, 0.0  ;;  %v1640_v60 = vadd.f32 %v1632_v57, %v4508_v2  ;;  %v58_v2 = vrot.slane %v43_v5, %v4747_v11 }
 0x91d   :  { %1646 = vadd.xlane.f32.xlu0 %v1645_v59  ;;  %v65_v13 = vrot.slane %v51_v12, %v4747_v11 }
 0x91e   :  { %v1642_v61 = vsel %vm122_vm0, %v1640_v60, 0.0  ;;  %v66_v16 = vcombine.high %v58_v2, %v58_v2 }
 0x91f   :  { %1643 = vadd.xlane.f32.xlu1 %v1642_v61  ;;  %v67_v17 = vcombine.high %v65_v13, %v65_v13 }
 0x920   :  { %v1794_v18 = vcombine.low %v58_v2, %v66_v16 }
 0x921   :  { %v1795_v20 = vcombine.low %v65_v13, %v67_v17 }
 0x922   :  { %v1802_v21 = vrot.slane %v1794_v18, %v4747_v11 }
 0x923   :  { %v1809_v22 = vrot.slane %v1795_v20, %v4747_v11 }
 0x925   :  { %v1810_v23 = vcombine.low %v1802_v21, %v1809_v22 }
 0x927   :  { %4132 = vmatmul.mubr.msk.f32.vlgmr.msra.gmra.mxu0 %vm122_vm0, %v1810_v23 }
 0x928   :  { %4134 = vmatprep.mubr.msk.f32.mxu0 %vm4437_vm1, %v4436_v6 }
 0x92b   :  { %4135 = vmatmul.mubr.msk.f32.gmra.mxu0 %vm122_vm0, %v1827_v45 }
 0x92c   :  { %4137 = vmatprep.mubr.msk.f32.mxu0 %vm4437_vm1, %v4436_v6 }
 0x92f   :  { %4138 = vmatmul.mubr.msk.f32.gmra.mxu0 %vm122_vm0, %v1835_v51 }
 0x930   :  { %4158 = vmatprep.mubr.msk.f32.mxu0 %vm4437_vm1, %v4436_v6 }
 0x9a6   :  { %v1647_v14 = vpop.xlane.xlu0 %1646 }
 0x9a7   :  { %v1650_v25 = vmul.f32 0.03125, %v1647_v14 }
 0x9a8   :  { %v1644_v26 = vpop.xlane.xlu1 %1643 }
 0x9a9   :  { %v1652_v27 = vsub.f32 %v1641_v58, %v1650_v25  ;;  %v1649_v28 = vmul.f32 0.03125, %v1644_v26 }
 0x9ab   :  { %v4759_v29 = vsub.f32 %v1640_v60, %v1649_v28  ;;  %v1654_v30 = vmul.f32 %v1652_v27, %v1652_v27 }
 0x9ad   :  { %v1658_v31 = vsel %vm122_vm0, %v1654_v30, 0.0  ;;  %v1653_v32 = vmul.f32 %v4759_v29, %v4759_v29 }
 0x9ae   :  { %1659 = vadd.xlane.f32.xlu1 %v1658_v31 }
 0x9af   :  { %v1655_v33 = vsel %vm122_vm0, %v1653_v32, 0.0 }
 0x9b0   :  { %1656 = vadd.xlane.f32.xlu0 %v1655_v33 }
 0x9bf   :  { %1707 = vrot.lane.b32.xlu1 %v4500_v0, %s4453_s16  ;;  %v1672_v0 = vrot.slane %v4542_v10, %v1671_v48 }
 0x9c3   :  { %1688 = vperm.xlu1 %4309, %v100_v52  }
 0x9c6   :  { %1683 = vperm.xlu0 %4308, %v99_v53  }
 0x9c7   :  { %1705 = vrot.lane.b32.xlu1 %v4502_v1, %s4453_s16 }
 0x9cb   :  { %1676 = vrot.lane.b32.xlu1 %v1672_v0, %s4438_s12 }
 0x9cf   :  { %1703 = vrot.lane.b32.xlu1 %v4511_v3, %s4453_s16 }
 0x9d3   :  { %1701 = vrot.lane.b32.xlu1 %v4517_v4, %s4453_s16 }
 0x9d7   :  { %1837 = vrot.lane.b32.xlu1 %v4804_v55, %s4438_s12 }
 0x9e7   :  { %v1912_v56 = vpop.f32.mrf.mxu0 }
 0x9e9   :  { %v4133_v1 = vpop.f32.mrf.mxu0 }
 0x9eb   :  { %v1917_v31 = vpop.f32.mrf.mxu0 }
 0x9ed   :  { %v4136_v36 = vpop.f32.mrf.mxu0 }
 0x9ef   :  { %v1922_v41 = vpop.f32.mrf.mxu0 }
 0x9f1   :  { %v4139_v46 = vpop.f32.mrf.mxu0 }
 0xa37   :  { %v1660_v57 = vpop.xlane.xlu1 %1659 }
 0xa38   :  { %v1662_v58 = vmul.f32 0.03125, %v1660_v57 }
 0xa39   :  { %v1657_v59 = vpop.xlane.xlu0 %1656 }
 0xa3a   :  { %v1664_v60 = vadd.f32 1e-05, %v1662_v58  ;;  %v1661_v61 = vmul.f32 0.03125, %v1657_v59 }
 0xa3b   :  { %v1708_v62 = vpop.permute.xlu1 %1707 }
 0xa3c   :  { %4344 = vrsqrt.f32 %v1664_v60  ;;  %v1663_v3 = vadd.f32 1e-05, %v1661_v61  ;;  %4112 = vmatprep.subr.mxu1 %v1708_v62 }
 0xa3d   :  { %4113 = vmatpush3.msra.mxu1 %v1708_v62 }
 0xa3e   :  { %4346 = vrsqrt.f32 %v1663_v3 }
 0xa3f   :  { %v4808_v4 = vpop.permute.xlu1 %1688 }
 0xa41   :  { %v4811_v18 = vpop.permute.xlu0 %1683 }
 0xa43   :  { %v1706_v10 = vpop.permute.xlu1 %1705 }
 0xa44   :  { %4114 = vmatprep.subr.mxu1 %v1706_v10 }
 0xa45   :  { %4115 = vmatpush3.msra.mxu1 %v1706_v10 }
 0xa47   :  { %v1677_v63 = vpop.permute.xlu1 %1676 }
 0xa49   :  { %v4345_v7 = vpop.eup %4344 }
 0xa4a   :  { %v1668_v9 = vmul.f32 %v4345_v7, %v1652_v27 }
 0xa4b   :  { %v4347_v5 = vpop.eup %4346  ;;  %v1704_v12 = vpop.permute.xlu1 %1703 }
 0xa4c   :  { %v1667_v2 = vmul.f32 %v4347_v5, %v4759_v29  ;;  %v1674_v13 = vmul.f32 %v1672_v0, %v1668_v9  ;;  %4116 = vmatprep.subr.mxu1 %v1704_v12 }
 0xa4d   :  { %4117 = vmatpush3.msra.mxu1 %v1704_v12  ;;  %v4900_v12 = vld [vmem:[%s5139_s4 + $0x8] sm:$0xff] }
 0xa4e   :  { %v1673_v16 = vmul.f32 %v1672_v0, %v1667_v2  ;;  %v1680_v17 = vadd.f32 %v1677_v63, %v1674_v13 }
 0xa4f   :  { %v1702_v20 = vpop.permute.xlu1 %1701 }
 0xa50   :  { %v1679_v21 = vadd.f32 %v1677_v63, %v1673_v16  ;;  %4118 = vmatprep.subr.mxu1 %v1702_v20  ;;  %v4818_v23 = vmul.f32 %v4808_v4, %v1680_v17 }
 0xa51   :  { %4119 = vmatpush3.msra.mxu1 %v1702_v20 }
 0xa52   :  { %v4814_v22 = vmul.f32 %v4811_v18, %v1679_v21  ;;  %4140 = vmatprep.subr.mxu1 %v4436_v6 }
 0xa53   :  { %v1838_v14 = vpop.permute.xlu1 %1837 }
 0xa54   :  { %4120 = vmatprep.mubr.msk.f32.mxu1 %vm122_vm0, %v4814_v22  ;;  %v1913_v25 = vadd.f32 %v1912_v56, %v1838_v14  ;;  %v1918_v35 = vadd.f32 %v1917_v31, %v1838_v14  ;;  %v1923_v45 = vadd.f32 %v1922_v41, %v1838_v14 }
 0xa55   :  { %4121 = vmatmul.mubr.msk.f32.vlgmr.msra.gmra.mxu1 %vm122_vm0, %v4818_v23 }
 0xa56   :  { %4144 = vmatprep.mubr.msk.f32.mxu1 %vm4437_vm1, %v4436_v6  ;;  %v1929_v26 = vcombine.high %v1913_v25, %v1913_v25  ;;  %v1936_v27 = vrot.slane %v1913_v25, %v4747_v11  ;;  %v1946_v37 = vcombine.high %v1918_v35, %v1918_v35  ;;  %v1953_v38 = vrot.slane %v1918_v35, %v4747_v11 }
 0xa57   :  { %v1969_v51 = vrot.slane %v1923_v45, %v4747_v11 }
 0xa58   :  { %v1943_v28 = vrot.slane %v1929_v26, %v4747_v11  ;;  %v1944_v29 = vcombine.high %v1936_v27, %v1936_v27  ;;  %v1960_v42 = vrot.slane %v1946_v37, %v4747_v11  ;;  %v1961_v43 = vcombine.high %v1953_v38, %v1953_v38 }
 0xa59   :  { %v4833_v44 = vrot.slane %v1953_v38, %v4747_v11  ;;  %v1970_v53 = vcombine.high %v1969_v51, %v1969_v51 }
 0xa5a   :  { %v1945_v30 = vcombine.high %v1943_v28, %v1943_v28  ;;  %v1971_v32 = vcombine.low %v1936_v27, %v1944_v29  ;;  %v2072_v47 = vcombine.low %v1961_v43, %v1960_v42  ;;  %v1962_v49 = vcombine.high %v1960_v42, %v1960_v42 }
 0xa5b   :  { %2194 = vrot.lane.b32.xlu0 %v4833_v44, %s4438_s12  ;;  %4141 = vmatpush3.xpose.msk.msra.mxu1 %vm207_vm2, %v4833_v44  ;;  %v4846_v56 = vrot.slane %v1970_v53, %v4747_v11 }
 0xa5c   :  { %v1972_v33 = vcombine.low %v1943_v28, %v1945_v30  ;;  %v1979_v39 = vrot.slane %v1971_v32, %v4747_v11  ;;  %4142 = vmatprep.subr.mxu1 %v4436_v6  ;;  %v2073_v48 = vcombine.low %v1962_v49, %v1969_v51  ;;  %v2080_v0 = vrot.slane %v2072_v47, %v4747_v11 }
 0xa5d   :  { %2275 = vrot.lane.b32.xlu1 %v4846_v56, %s4438_s12 }
 0xa5e   :  { %v1986_v40 = vrot.slane %v1972_v33, %v4747_v11  ;;  %v2087_v54 = vrot.slane %v2073_v48, %v4747_v11 }
 0xa60   :  { %v4841_v52 = vcombine.low %v1979_v39, %v1986_v40  ;;  %v4851_v1 = vcombine.low %v2080_v0, %v2087_v54 }
 0xa62   :  { %4143 = vmatpush3.xpose.msk.msra.mxu1 %vm207_vm2, %v4841_v52  ;;  %2273 = vrot.lane.b32.xlu0 %v4851_v1, %s4438_s12 }
 0xa63   :  { %4147 = vmatprep.subr.mxu1 %v4436_v6  ;;  %2192 = vrot.lane.b32.xlu1 %v4841_v52, %s4438_s12 }
 0xa66   :  { %2439 = vrot.lane.b32.xlu0 %v4846_v56, %s4441_s15 }
 0xa67   :  { %2357 = vrot.lane.b32.xlu1 %v4833_v44, %s4441_s15 }
 0xa6b   :  { %2355 = vrot.lane.b32.xlu1 %v4841_v52, %s4441_s15 }
 0xacd   :  { %v2195_v11 = vpop.permute.xlu0 %2194 }
 0xace   :  { %4155 = vmatpush3.msk.msra.mxu0 %vm2200_vm5, %v2195_v11 }
 0xacf   :  { %4156 = vmatprep.subr.mxu0 %v4436_v6  ;;  %v2276_v57 = vpop.permute.xlu1 %2275 }
 0xad4   :  { %v2274_v3 = vpop.permute.xlu0 %2273 }
 0xad5   :  { %v2193_v58 = vpop.permute.xlu1 %2192 }
 0xad6   :  { %4157 = vmatpush3.msra.mxu0 %v2193_v58 }
 0xad7   :  { %4168 = vmatprep.subr.mxu0 %v4436_v6 }
 0xad8   :  { %v2440_v30 = vpop.permute.xlu0 %2439 }
 0xad9   :  { %v2358_v27 = vpop.permute.xlu1 %2357 }
 0xadd   :  { %v2356_v28 = vpop.permute.xlu1 %2355 }
 0xb15   :  { %v4122_v59 = vpop.f32.mrf.mxu1 }
 0xb16   :  { %v4881_v62 = vadd.f32 %v4122_v59, %v4804_v55 }
 0xb17   :  { %v1785_v60 = vpop.f32.mrf.mxu1 }
 0xb18   :  { %v4869_v61 = vadd.f32 %v1785_v60, %v4804_v55  ;;  %v4894_v55 = vld [vmem:[%s5139_s4] sm:$0xff] }
 0xb1a   :  { %4145 = vmatmul.mubr.msk.f32.vlgmr.msra.gmra.mxu1 %vm207_vm2, %v4869_v61 }
 0xb1b   :  { %4148 = vmatpush3.xpose.msk.msra.mxu1 %vm207_vm2, %v4846_v56  ;;  %4151 = vmatprep.mubr.msk.f32.mxu1 %vm4437_vm1, %v4436_v6 }
 0xb1c   :  { %4149 = vmatprep.subr.mxu1 %v4436_v6 }
 0xb1f   :  { %4150 = vmatpush3.xpose.msk.msra.mxu1 %vm207_vm2, %v4851_v1 }
 0xb20   :  { %4161 = vmatprep.subr.mxu1 %v4436_v6 }
 0xb22   :  { %4152 = vmatmul.mubr.msk.f32.vlgmr.msra.gmra.mxu1 %vm207_vm2, %v4881_v62 }
 0xb23   :  { %4162 = vmatpush3.msk.msra.mxu1 %vm2200_vm5, %v2276_v57  ;;  %4165 = vmatprep.mubr.msk.f32.mxu1 %vm4437_vm1, %v4436_v6 }
 0xb24   :  { %4163 = vmatprep.subr.mxu1 %v4436_v6 }
 0xb25   :  { %4164 = vmatpush3.msra.mxu1 %v2274_v3 }
 0xb26   :  { %4175 = vmatprep.subr.mxu1 %v4436_v6 }
 0xbda   :  { %v2068_v10 = vpop.f32.mrf.mxu1 }
 0xbdb   :  { %v2173_v63 = vmul.f32 0.35355338, %v2068_v10 }
 0xbdc   :  { %v4146_v7 = vpop.f32.mrf.mxu1 }
 0xbdd   :  { %v2175_v9 = vadd.f32 %v2173_v63, %v4894_v55 }
 0xbdf   :  { %v2177_v5 = vmul.f32 1.442695, %v2175_v9 }
 0xbe1   :  { %4348 = vpow2.f32 %v2177_v5 }
 0xbe2   :  { %v2169_v2 = vpop.f32.mrf.mxu1 }
 0xbe3   :  { %v2174_v13 = vmul.f32 0.35355338, %v2169_v2 }
 0xbe4   :  { %v4153_v16 = vpop.f32.mrf.mxu1 }
 0xbe5   :  { %v2176_v17 = vadd.f32 %v2174_v13, %v4900_v12 }
 0xbe7   :  { %v2179_v20 = vmul.f32 1.442695, %v2176_v17 }
 0xbe9   :  { %4350 = vpow2.f32 %v2179_v20 }
 0xbee   :  { %v4349_v21 = vpop.eup %4348 }
 0xbef   :  { %v2182_v14 = vsel %vm2181_vm6, %v4349_v21, 0.0 }
 0xbf0   :  { %2183 = vadd.xlane.f32.xlu1 %v2182_v14 }
 0xbf6   :  { %v4351_v25 = vpop.eup %4350 }
 0xbf7   :  { %v2185_v26 = vsel %vm2181_vm6, %v4351_v25, 0.0 }
 0xbf8   :  { %2186 = vadd.xlane.f32.xlu0 %v2185_v26 }
 0xc01   :  { %2353 = vrot.lane.b32.xlu1 %v4869_v61, %s4441_s15 }
 0xc05   :  { %2617 = vrot.lane.b32.xlu1 %v4846_v56, %s4440_s14 }
 0xc09   :  { %2535 = vrot.lane.b32.xlu1 %v4841_v52, %s4440_s14 }
 0xc0d   :  { %2699 = vrot.lane.b32.xlu1 %v4833_v44, %s4444_s21 }
 0xc0e   :  { %2437 = vrot.lane.b32.xlu0 %v4851_v1, %s4441_s15 }
 0xc11   :  { %2697 = vrot.lane.b32.xlu1 %v4841_v52, %s4444_s21 }
 0xc12   :  { %2435 = vrot.lane.b32.xlu0 %v4881_v62, %s4441_s15 }
 0xc16   :  { %2537 = vrot.lane.b32.xlu0 %v4833_v44, %s4440_s14 }
 0xc1a   :  { %2615 = vrot.lane.b32.xlu0 %v4851_v1, %s4440_s14 }
 0xc1e   :  { %2781 = vrot.lane.b32.xlu0 %v4846_v56, %s4444_s21 }
 0xc79   :  { %v2184_v29 = vpop.xlane.xlu1 %2183 }
 0xc7a   :  { %4352 = vrcp.f32 %v2184_v29 }
 0xc7d   :  { %v2354_v36 = vpop.permute.xlu1 %2353 }
 0xc81   :  { %v2187_v31 = vpop.xlane.xlu0 %2186  ;;  %v2618_v38 = vpop.permute.xlu1 %2617 }
 0xc82   :  { %4354 = vrcp.f32 %v2187_v31 }
 0xc85   :  { %v2438_v32 = vpop.permute.xlu0 %2437  ;;  %v2536_v42 = vpop.permute.xlu1 %2535 }
 0xc87   :  { %v4353_v33 = vpop.eup %4352 }
 0xc88   :  { %v2189_v35 = vmul.f32 %v4353_v33, %v4349_v21 }
 0xc89   :  { %v2436_v37 = vpop.permute.xlu0 %2435  ;;  %v2700_v9 = vpop.permute.xlu1 %2699 }
 0xc8a   :  { %4159 = vmatmul.mubr.msk.f32.vlgmr.msra.gmra.mxu0 %vm2181_vm6, %v2189_v35 }
 0xc8b   :  { %4169 = vmatpush3.xpose.msk.msra.mxu0 %vm207_vm2, %v2358_v27  ;;  %4172 = vmatprep.mubr.msk.f32.mxu0 %vm4437_vm1, %v4436_v6 }
 0xc8c   :  { %4170 = vmatprep.subr.mxu0 %v4436_v6 }
 0xc8d   :  { %v2538_v41 = vpop.permute.xlu0 %2537  ;;  %v2698_v5 = vpop.permute.xlu1 %2697 }
 0xc8f   :  { %v4355_v39 = vpop.eup %4354  ;;  %4171 = vmatpush3.xpose.msk.msra.mxu0 %vm207_vm2, %v2356_v28 }
 0xc90   :  { %v2191_v40 = vmul.f32 %v4355_v39, %v4351_v25  ;;  %4182 = vmatprep.subr.mxu0 %v4436_v6 }
 0xc91   :  { %v2616_v43 = vpop.permute.xlu0 %2615 }
 0xc92   :  { %4166 = vmatmul.mubr.msk.f32.vlgmr.msra.gmra.mxu1 %vm2181_vm6, %v2191_v40  ;;  %4173 = vmatmul.mubr.msk.f32.vlgmr.msra.gmra.mxu0 %vm207_vm2, %v2354_v36 }
 0xc93   :  { %4176 = vmatpush3.xpose.msk.msra.mxu1 %vm207_vm2, %v2440_v30  ;;  %4183 = vmatpush3.msk.msra.mxu0 %vm2200_vm5, %v2538_v41 }
 0xc94   :  { %4184 = vmatprep.subr.mxu0 %v4436_v6  ;;  %4177 = vmatprep.subr.mxu1 %v4436_v6 }
 0xc95   :  { %4185 = vmatpush3.msra.mxu0 %v2536_v42  ;;  %4179 = vmatprep.mubr.msk.f32.mxu1 %vm4437_vm1, %v4436_v6  ;;  %v2782_v13 = vpop.permute.xlu0 %2781 }
 0xc96   :  { %4186 = vmatprep.mubr.msk.f32.mxu0 %vm4437_vm1, %v4436_v6  ;;  %4196 = vmatprep.subr.mxu0 %v4436_v6 }
 0xc97   :  { %4178 = vmatpush3.xpose.msk.msra.mxu1 %vm207_vm2, %v2438_v32 }
 0xc98   :  { %4189 = vmatprep.subr.mxu1 %v4436_v6 }
 0xc9a   :  { %4180 = vmatmul.mubr.msk.f32.vlgmr.msra.gmra.mxu1 %vm207_vm2, %v2436_v37 }
 0xc9b   :  { %4190 = vmatpush3.msk.msra.mxu1 %vm2200_vm5, %v2618_v38  ;;  %4193 = vmatprep.mubr.msk.f32.mxu1 %vm4437_vm1, %v4436_v6 }
 0xc9c   :  { %4191 = vmatprep.subr.mxu1 %v4436_v6 }
 0xc9d   :  { %4192 = vmatpush3.msra.mxu1 %v2616_v43 }
 0xc9e   :  { %4203 = vmatprep.subr.mxu1 %v4436_v6 }
 0xd4a   :  { %v4951_v45 = vpop.f32.mrf.mxu0 }
 0xd4c   :  { %v4160_v46 = vpop.f32.mrf.mxu0 }
 0xd52   :  { %v4953_v47 = vpop.f32.mrf.mxu1  ;;  %v2431_v49 = vpop.f32.mrf.mxu0 }
 0xd53   :  { %v2517_v51 = vmul.f32 0.35355338, %v2431_v49 }
 0xd54   :  { %v4167_v53 = vpop.f32.mrf.mxu1  ;;  %v4174_v48 = vpop.f32.mrf.mxu0 }
 0xd55   :  { %v2519_v0 = vadd.f32 %v2517_v51, %v4894_v55 }
 0xd57   :  { %v2521_v54 = vmul.f32 1.442695, %v2519_v0 }
 0xd59   :  { %4356 = vpow2.f32 %v2521_v54 }
 0xd5a   :  { %v2513_v11 = vpop.f32.mrf.mxu1 }
 0xd5b   :  { %v2518_v57 = vmul.f32 0.35355338, %v2513_v11 }
 0xd5c   :  { %v4181_v58 = vpop.f32.mrf.mxu1 }
 0xd5d   :  { %v2520_v59 = vadd.f32 %v2518_v57, %v4900_v12 }
 0xd5f   :  { %v2523_v60 = vmul.f32 1.442695, %v2520_v59 }
 0xd61   :  { %4358 = vpow2.f32 %v2523_v60 }
 0xd66   :  { %v4357_v3 = vpop.eup %4356 }
 0xd67   :  { %v2525_v10 = vsel %vm2181_vm6, %v4357_v3, 0.0 }
 0xd68   :  { %2526 = vadd.xlane.f32.xlu1 %v2525_v10 }
 0xd6e   :  { %v4359_v63 = vpop.eup %4358 }
 0xd6f   :  { %v2528_v7 = vsel %vm2181_vm6, %v4359_v63, 0.0 }
 0xd70   :  { %2529 = vadd.xlane.f32.xlu0 %v2528_v7 }
 0xd79   :  { %2695 = vrot.lane.b32.xlu1 %v4869_v61, %s4444_s21 }
 0xd7d   :  { %2959 = vrot.lane.b32.xlu1 %v4846_v56, %s4443_s3 }
 0xd81   :  { %2877 = vrot.lane.b32.xlu1 %v4841_v52, %s4443_s3 }
 0xd85   :  { %3041 = vrot.lane.b32.xlu1 %v4833_v44, %s4447_s24 }
 0xd86   :  { %2779 = vrot.lane.b32.xlu0 %v4851_v1, %s4444_s21 }
 0xd89   :  { %3039 = vrot.lane.b32.xlu1 %v4841_v52, %s4447_s24 }
 0xd8a   :  { %2777 = vrot.lane.b32.xlu0 %v4881_v62, %s4444_s21 }
 0xd8e   :  { %2879 = vrot.lane.b32.xlu0 %v4833_v44, %s4443_s3 }
 0xd92   :  { %2957 = vrot.lane.b32.xlu0 %v4851_v1, %s4443_s3 }
 0xd96   :  { %3123 = vrot.lane.b32.xlu0 %v4846_v56, %s4447_s24 }
 0xdf1   :  { %v2527_v2 = vpop.xlane.xlu1 %2526 }
 0xdf2   :  { %4360 = vrcp.f32 %v2527_v2 }
 0xdf5   :  { %v2696_v21 = vpop.permute.xlu1 %2695 }
 0xdf9   :  { %v2530_v16 = vpop.xlane.xlu0 %2529  ;;  %v2960_v26 = vpop.permute.xlu1 %2959 }
 0xdfa   :  { %4362 = vrcp.f32 %v2530_v16 }
 0xdfd   :  { %v2780_v17 = vpop.permute.xlu0 %2779  ;;  %v2878_v30 = vpop.permute.xlu1 %2877 }
 0xdff   :  { %v4361_v20 = vpop.eup %4360 }
 0xe00   :  { %v2532_v14 = vmul.f32 %v4361_v20, %v4357_v3 }
 0xe01   :  { %v2778_v25 = vpop.permute.xlu0 %2777  ;;  %v3042_v11 = vpop.permute.xlu1 %3041 }
 0xe02   :  { %4187 = vmatmul.mubr.msk.f32.vlgmr.msra.gmra.mxu0 %vm2181_vm6, %v2532_v14 }
 0xe03   :  { %4197 = vmatpush3.xpose.msk.msra.mxu0 %vm207_vm2, %v2700_v9  ;;  %4200 = vmatprep.mubr.msk.f32.mxu0 %vm4437_vm1, %v4436_v6 }
 0xe04   :  { %4198 = vmatprep.subr.mxu0 %v4436_v6 }
 0xe05   :  { %v2880_v29 = vpop.permute.xlu0 %2879  ;;  %v3040_v57 = vpop.permute.xlu1 %3039 }
 0xe07   :  { %v4363_v27 = vpop.eup %4362  ;;  %4199 = vmatpush3.xpose.msk.msra.mxu0 %vm207_vm2, %v2698_v5 }
 0xe08   :  { %v2534_v28 = vmul.f32 %v4363_v27, %v4359_v63  ;;  %4210 = vmatprep.subr.mxu0 %v4436_v6 }
 0xe09   :  { %v2958_v31 = vpop.permute.xlu0 %2957 }
 0xe0a   :  { %4194 = vmatmul.mubr.msk.f32.vlgmr.msra.gmra.mxu1 %vm2181_vm6, %v2534_v28  ;;  %4201 = vmatmul.mubr.msk.f32.vlgmr.msra.gmra.mxu0 %vm207_vm2, %v2696_v21 }
 0xe0b   :  { %4204 = vmatpush3.xpose.msk.msra.mxu1 %vm207_vm2, %v2782_v13  ;;  %4211 = vmatpush3.msk.msra.mxu0 %vm2200_vm5, %v2880_v29 }
 0xe0c   :  { %4212 = vmatprep.subr.mxu0 %v4436_v6  ;;  %4205 = vmatprep.subr.mxu1 %v4436_v6 }
 0xe0d   :  { %4213 = vmatpush3.msra.mxu0 %v2878_v30  ;;  %4207 = vmatprep.mubr.msk.f32.mxu1 %vm4437_vm1, %v4436_v6  ;;  %v3124_v59 = vpop.permute.xlu0 %3123 }
 0xe0e   :  { %4214 = vmatprep.mubr.msk.f32.mxu0 %vm4437_vm1, %v4436_v6  ;;  %4224 = vmatprep.subr.mxu0 %v4436_v6 }
 0xe0f   :  { %4206 = vmatpush3.xpose.msk.msra.mxu1 %vm207_vm2, %v2780_v17 }
 0xe10   :  { %4217 = vmatprep.subr.mxu1 %v4436_v6 }
 0xe12   :  { %4208 = vmatmul.mubr.msk.f32.vlgmr.msra.gmra.mxu1 %vm207_vm2, %v2778_v25 }
 0xe13   :  { %4218 = vmatpush3.msk.msra.mxu1 %vm2200_vm5, %v2960_v26  ;;  %4221 = vmatprep.mubr.msk.f32.mxu1 %vm4437_vm1, %v4436_v6 }
 0xe14   :  { %4219 = vmatprep.subr.mxu1 %v4436_v6 }
 0xe15   :  { %4220 = vmatpush3.msra.mxu1 %v2958_v31 }
 0xe16   :  { %4231 = vmatprep.subr.mxu1 %v4436_v6 }
 0xec2   :  { %v5005_v32 = vpop.f32.mrf.mxu0 }
 0xec4   :  { %v4188_v33 = vpop.f32.mrf.mxu0 }
 0xeca   :  { %v5007_v35 = vpop.f32.mrf.mxu1  ;;  %v2773_v36 = vpop.f32.mrf.mxu0 }
 0xecb   :  { %v2859_v37 = vmul.f32 0.35355338, %v2773_v36 }
 0xecc   :  { %v4195_v38 = vpop.f32.mrf.mxu1  ;;  %v4202_v39 = vpop.f32.mrf.mxu0 }
 0xecd   :  { %v2861_v40 = vadd.f32 %v2859_v37, %v4894_v55 }
 0xecf   :  { %v2863_v41 = vmul.f32 1.442695, %v2861_v40 }
 0xed1   :  { %4364 = vpow2.f32 %v2863_v41 }
 0xed2   :  { %v2855_v42 = vpop.f32.mrf.mxu1 }
 0xed3   :  { %v2860_v43 = vmul.f32 0.35355338, %v2855_v42 }
 0xed4   :  { %v4209_v46 = vpop.f32.mrf.mxu1 }
 0xed5   :  { %v2862_v49 = vadd.f32 %v2860_v43, %v4900_v12 }
 0xed7   :  { %v2865_v51 = vmul.f32 1.442695, %v2862_v49 }
 0xed9   :  { %4366 = vpow2.f32 %v2865_v51 }
 0xede   :  { %v4365_v53 = vpop.eup %4364 }
 0xedf   :  { %v2867_v48 = vsel %vm2181_vm6, %v4365_v53, 0.0 }
 0xee0   :  { %2868 = vadd.xlane.f32.xlu1 %v2867_v48 }
 0xee6   :  { %v4367_v0 = vpop.eup %4366 }
 0xee7   :  { %v2870_v54 = vsel %vm2181_vm6, %v4367_v0, 0.0 }
 0xee8   :  { %2871 = vadd.xlane.f32.xlu0 %v2870_v54 }
 0xef1   :  { %3037 = vrot.lane.b32.xlu1 %v4869_v61, %s4447_s24 }
 0xef5   :  { %3301 = vrot.lane.b32.xlu1 %v4846_v56, %s4446_s23 }
 0xefe   :  { %3121 = vrot.lane.b32.xlu0 %v4851_v1, %s4447_s24 }
 0xf02   :  { %3119 = vrot.lane.b32.xlu0 %v4881_v62, %s4447_s24 }
 0xf06   :  { %3221 = vrot.lane.b32.xlu0 %v4833_v44, %s4446_s23 }
 0xf69   :  { %v2869_v58 = vpop.xlane.xlu1 %2868 }
 0xf6a   :  { %4368 = vrcp.f32 %v2869_v58 }
 0xf6d   :  { %v3038_v63 = vpop.permute.xlu1 %3037 }
 0xf71   :  { %v2872_v60 = vpop.xlane.xlu0 %2871  ;;  %v3302_v9 = vpop.permute.xlu1 %3301 }
 0xf72   :  { %4370 = vrcp.f32 %v2872_v60 }
 0xf75   :  { %v3122_v61 = vpop.permute.xlu0 %3121 }
 0xf77   :  { %v4369_v3 = vpop.eup %4368 }
 0xf78   :  { %v2874_v10 = vmul.f32 %v4369_v3, %v4365_v53 }
 0xf79   :  { %v3120_v56 = vpop.permute.xlu0 %3119 }
 0xf7a   :  { %4215 = vmatmul.mubr.msk.f32.vlgmr.msra.gmra.mxu0 %vm2181_vm6, %v2874_v10 }
 0xf7b   :  { %4225 = vmatpush3.xpose.msk.msra.mxu0 %vm207_vm2, %v3042_v11  ;;  %4228 = vmatprep.mubr.msk.f32.mxu0 %vm4437_vm1, %v4436_v6 }
 0xf7c   :  { %4226 = vmatprep.subr.mxu0 %v4436_v6 }
 0xf7d   :  { %v3222_v7 = vpop.permute.xlu0 %3221 }
 0xf7f   :  { %v4371_v44 = vpop.eup %4370  ;;  %4227 = vmatpush3.xpose.msk.msra.mxu0 %vm207_vm2, %v3040_v57 }
 0xf80   :  { %v2876_v62 = vmul.f32 %v4371_v44, %v4367_v0  ;;  %4238 = vmatprep.subr.mxu0 %v4436_v6 }
 0xf82   :  { %4222 = vmatmul.mubr.msk.f32.vlgmr.msra.gmra.mxu1 %vm2181_vm6, %v2876_v62  ;;  %4229 = vmatmul.mubr.msk.f32.vlgmr.msra.gmra.mxu0 %vm207_vm2, %v3038_v63 }
 0xf83   :  { %4232 = vmatpush3.xpose.msk.msra.mxu1 %vm207_vm2, %v3124_v59  ;;  %4239 = vmatpush3.msk.msra.mxu0 %vm2200_vm5, %v3222_v7 }
 0xf84   :  { %4233 = vmatprep.subr.mxu1 %v4436_v6  ;;  %4235 = vmatprep.mubr.msk.f32.mxu1 %vm4437_vm1, %v4436_v6 }
 0xf85   :  { %4240 = vmatprep.subr.mxu0 %v4436_v6  ;;  %4242 = vmatprep.mubr.msk.f32.mxu0 %vm4437_vm1, %v4436_v6 }
 0xf87   :  { %4234 = vmatpush3.xpose.msk.msra.mxu1 %vm207_vm2, %v3122_v61 }
 0xf88   :  { %4245 = vmatprep.subr.mxu1 %v4436_v6 }
 0xf8a   :  { %4236 = vmatmul.mubr.msk.f32.vlgmr.msra.gmra.mxu1 %vm207_vm2, %v3120_v56 }
 0xf8b   :  { %4246 = vmatpush3.msk.msra.mxu1 %vm2200_vm5, %v3302_v9  ;;  %4249 = vmatprep.mubr.msk.f32.mxu1 %vm4437_vm1, %v4436_v6 }
 0xf8c   :  { %4247 = vmatprep.subr.mxu1 %v4436_v6 }
0x103a   :  { %v2953_v5 = vpop.f32.mrf.mxu0 }
0x103c   :  { %v4216_v2 = vpop.f32.mrf.mxu0 }
0x1042   :  { %v3033_v13 = vpop.f32.mrf.mxu1  ;;  %v3115_v16 = vpop.f32.mrf.mxu0 }
0x1043   :  { %v3201_v17 = vmul.f32 0.35355338, %v3115_v16 }
0x1044   :  { %v4223_v20 = vpop.f32.mrf.mxu1  ;;  %v4230_v21 = vpop.f32.mrf.mxu0 }
0x1045   :  { %v3203_v14 = vadd.f32 %v3201_v17, %v4894_v55  ;;  %v5095_v20 = vld [vmem:[%s5141_s6] sm:$0xff]  ;;  %s4454_s6 = smov [#allocation5]  }
0x1047   :  { %v3205_v25 = vmul.f32 1.442695, %v3203_v14  ;;  %v116_v14 = vld [vmem:[#allocation2 + $0x58] sm:$0xff] }
0x1049   :  { %4372 = vpow2.f32 %v3205_v25  ;;  %v113_v25 = vld [vmem:[#allocation2 + $0x40] sm:$0xff] }
0x104a   :  { %v3197_v26 = vpop.f32.mrf.mxu1 }
0x104b   :  { %v3202_v27 = vmul.f32 0.35355338, %v3197_v26  ;;  %v110_v26 = vld [vmem:[#allocation2 + $0x28] sm:$0xff] }
0x104c   :  { %v4237_v28 = vpop.f32.mrf.mxu1 }
0x104d   :  { %v3204_v29 = vadd.f32 %v3202_v27, %v4900_v12  ;;  %v107_v27 = vld [vmem:[#allocation2 + $0x10] sm:$0xff]  ;;  %v3550_v28 = vsub.s32 3, %v4532_v8 }
0x104f   :  { %v3207_v30 = vmul.f32 1.442695, %v3204_v29  ;;  %v3551_v29 = vrot.slane %v5095_v20, %v3550_v28 }
0x1051   :  { %4374 = vpow2.f32 %v3207_v30 }
0x1056   :  { %v4373_v31 = vpop.eup %4372 }
0x1057   :  { %v3209_v6 = vsel %vm2181_vm6, %v4373_v31, 0.0 }
0x1058   :  { %3210 = vadd.xlane.f32.xlu1 %v3209_v6 }
0x105e   :  { %v4375_v33 = vpop.eup %4374 }
0x105f   :  { %v3212_v36 = vsel %vm2181_vm6, %v4375_v33, 0.0 }
0x1060   :  { %3213 = vadd.xlane.f32.xlu0 %v3212_v36 }
0x1069   :  { %3219 = vrot.lane.b32.xlu1 %v4841_v52, %s4446_s23 }
0x106d   :  { %3415 = vrot.lane.b32.xlu1 %v4688_v19, %s4453_s16 }
0x1071   :  { %3381 = vrot.lane.b32.xlu1 %v5005_v32, %s4449_s26 }
0x1075   :  { %3383 = vrot.lane.b32.xlu1 %v5007_v35, %s4449_s26 }
0x1076   :  { %3299 = vrot.lane.b32.xlu0 %v4851_v1, %s4446_s23 }
0x1079   :  { %3391 = vrot.lane.b32.xlu1 %v3033_v13, %s4450_s27 }
0x107a   :  { %3413 = vrot.lane.b32.xlu0 %v4695_v24, %s4453_s16 }
0x107d   :  { %3409 = vrot.lane.b32.xlu1 %v4709_v34, %s4453_s16 }
0x107e   :  { %3411 = vrot.lane.b32.xlu0 %v4701_v15, %s4453_s16 }
0x1081   :  { %3422 = vrot.lane.b32.xlu1 %v4738_v50, %s4438_s12 }
0x1082   :  { %3389 = vrot.lane.b32.xlu0 %v2953_v5, %s4450_s27 }
0x10e1   :  { %v3211_v19 = vpop.xlane.xlu1 %3210 }
0x10e2   :  { %4376 = vrcp.f32 %v3211_v19 }
0x10e5   :  { %v3220_v52 = vpop.permute.xlu1 %3219 }
0x10e6   :  { %4241 = vmatpush3.msra.mxu0 %v3220_v52 }
0x10e9   :  { %v3214_v1 = vpop.xlane.xlu0 %3213  ;;  %v3416_v55 = vpop.permute.xlu1 %3415 }
0x10ea   :  { %4378 = vrcp.f32 %v3214_v1  ;;  %4252 = vmatprep.subr.mxu0 %v3416_v55 }
0x10ed   :  { %v3300_v24 = vpop.permute.xlu0 %3299  ;;  %v3382_v37 = vpop.permute.xlu1 %3381 }
0x10ee   :  { %4248 = vmatpush3.msra.mxu1 %v3300_v24  ;;  %v3403_v51 = vsel %vm207_vm2, %v4951_v45, %v3382_v37 }
0x10ef   :  { %v4377_v12 = vpop.eup %4376  ;;  %4263 = vmatprep.subr.mxu1 %v116_v14 }
0x10f0   :  { %v3216_v34 = vmul.f32 %v4377_v12, %v4373_v31 }
0x10f1   :  { %v3414_v32 = vpop.permute.xlu0 %3413  ;;  %v3384_v38 = vpop.permute.xlu1 %3383 }
0x10f2   :  { %4243 = vmatmul.mubr.msk.f32.vlgmr.msra.gmra.mxu0 %vm2181_vm6, %v3216_v34  ;;  %v3404_v54 = vsel %vm207_vm2, %v4953_v47, %v3384_v38 }
0x10f3   :  { %4253 = vmatpush3.msra.mxu0 %v3416_v55 }
0x10f4   :  { %4254 = vmatprep.subr.mxu0 %v3414_v32 }
0x10f5   :  { %v3412_v15 = vpop.permute.xlu0 %3411  ;;  %4255 = vmatpush3.msra.mxu0 %v3414_v32  ;;  %v3392_v39 = vpop.permute.xlu1 %3391 }
0x10f6   :  { %4256 = vmatprep.subr.mxu0 %v3412_v15  ;;  %v3406_v11 = vsel %vm1533_vm3, %v3404_v54, %v3392_v39 }
0x10f7   :  { %v4379_v50 = vpop.eup %4378  ;;  %4257 = vmatpush3.msra.mxu0 %v3412_v15 }
0x10f8   :  { %v3218_v35 = vmul.f32 %v4379_v50, %v4375_v33 }
0x10f9   :  { %v3410_v40 = vpop.permute.xlu1 %3409  ;;  %v3390_v49 = vpop.permute.xlu0 %3389 }
0x10fa   :  { %4250 = vmatmul.mubr.msk.f32.vlgmr.msra.gmra.mxu1 %vm2181_vm6, %v3218_v35  ;;  %4258 = vmatprep.subr.mxu0 %v3410_v40  ;;  %v3405_v53 = vsel %vm1533_vm3, %v3403_v51, %v3390_v49 }
0x10fb   :  { %4259 = vmatpush3.msra.mxu0 %v3410_v40  ;;  %4264 = vmatpush3.msra.mxu1 %v116_v14 }
0x10fc   :  { %4265 = vmatprep.subr.mxu1 %v113_v25 }
0x10fd   :  { %v3423_v59 = vpop.permute.xlu1 %3422  ;;  %4266 = vmatpush3.msra.mxu1 %v113_v25 }
0x10fe   :  { %4267 = vmatprep.subr.mxu1 %v110_v26 }
0x10ff   :  { %4268 = vmatpush3.msra.mxu1 %v110_v26 }
0x1100   :  { %4269 = vmatprep.subr.mxu1 %v107_v27 }
0x1101   :  { %4270 = vmatpush3.msra.mxu1 %v107_v27 }
0x11b2   :  { %v3295_v41 = vpop.f32.mrf.mxu0 }
0x11b3   :  { %3397 = vrot.lane.b32.xlu0 %v3295_v41, %s4435_s28 }
0x11b4   :  { %v4244_v42 = vpop.f32.mrf.mxu0 }
0x11ba   :  { %v3375_v43 = vpop.f32.mrf.mxu1 }
0x11bb   :  { %3399 = vrot.lane.b32.xlu0 %v3375_v43, %s4435_s28 }
0x11bc   :  { %v4251_v46 = vpop.f32.mrf.mxu1 }
0x1225   :  { %v3398_v48 = vpop.permute.xlu0 %3397 }
0x1226   :  { %v3407_v0 = vsel %vm1536_vm4, %v3405_v53, %v3398_v48 }
0x1227   :  { %4260 = vmatprep.mubr.msk.f32.mxu0 %vm122_vm0, %v3407_v0 }
0x122d   :  { %v3400_v57 = vpop.permute.xlu0 %3399 }
0x122e   :  { %v3408_v58 = vsel %vm1536_vm4, %v3406_v11, %v3400_v57 }
0x122f   :  { %4261 = vmatmul.mubr.msk.f32.vlgmr.msra.gmra.mxu0 %vm122_vm0, %v3408_v58 }
0x12ef   :  { %v4262_v60 = vpop.f32.mrf.mxu0 }
0x12f0   :  { %v3503_v45 = vadd.f32 %v4262_v60, %v3423_v59 }
0x12f1   :  { %v3497_v61 = vpop.f32.mrf.mxu0 }
0x12f2   :  { %v3507_v3 = vadd.f32 %v3503_v45, %v4818_v23  ;;  %v3498_v10 = vadd.f32 %v3497_v61, %v3423_v59 }
0x12f4   :  { %v3506_v56 = vadd.f32 %v3498_v10, %v4814_v22  ;;  %v3511_v44 = vsel %vm122_vm0, %v3507_v3, 0.0  ;;  %v3536_v22 = vsub.s32 5, %v4532_v8 }
0x12f5   :  { %3512 = vadd.xlane.f32.xlu1 %v3511_v44 }
0x12f6   :  { %v3508_v47 = vsel %vm122_vm0, %v3506_v56, 0.0  ;;  %v3537_v21 = vrot.slane %v5095_v20, %v3536_v22 }
0x12f7   :  { %3509 = vadd.xlane.f32.xlu0 %v3508_v47 }
0x1306   :  { %3645 = vrot.lane.b32.xlu1 %v116_v14, %s4439_s13 }
0x130a   :  { %3643 = vrot.lane.b32.xlu1 %v113_v25, %s4439_s13 }
0x130e   :  { %3641 = vrot.lane.b32.xlu1 %v110_v26, %s4439_s13 }
0x1312   :  { %3648 = vrot.lane.b32.xlu1 %v3551_v29, %s4439_s13 }
0x137e   :  { %v3513_v62 = vpop.xlane.xlu1 %3512 }
0x137f   :  { %v3515_v63 = vmul.f32 0.03125, %v3513_v62 }
0x1380   :  { %v3510_v7 = vpop.xlane.xlu0 %3509 }
0x1381   :  { %v3514_v9 = vmul.f32 0.03125, %v3510_v7  ;;  %v3517_v5 = vsub.f32 %v3507_v3, %v3515_v63 }
0x1382   :  { %v3646_v52 = vpop.permute.xlu1 %3645 }
0x1383   :  { %v3516_v2 = vsub.f32 %v3506_v56, %v3514_v9  ;;  %v3519_v17 = vmul.f32 %v3517_v5, %v3517_v5  ;;  %4274 = vmatprep.subr.msk.mxu0 %vm3651_vm7, %v3646_v52 }
0x1384   :  { %4275 = vmatpush3.xpose.msk.msra.mxu0 %vm3651_vm7, %v3646_v52 }
0x1385   :  { %v3518_v13 = vmul.f32 %v3516_v2, %v3516_v2  ;;  %v3523_v23 = vsel %vm122_vm0, %v3519_v17, 0.0 }
0x1386   :  { %v3644_v1 = vpop.permute.xlu1 %3643 }
0x1387   :  { %v3520_v16 = vsel %vm122_vm0, %v3518_v13, 0.0  ;;  %4276 = vmatprep.subr.msk.mxu0 %vm3651_vm7, %v3644_v1 }
0x1388   :  { %3521 = vadd.xlane.f32.xlu0 %v3520_v16  ;;  %4277 = vmatpush3.xpose.msk.msra.mxu0 %vm3651_vm7, %v3644_v1 }
0x138a   :  { %v3642_v55 = vpop.permute.xlu1 %3641 }
0x138b   :  { %4278 = vmatprep.subr.msk.mxu0 %vm3651_vm7, %v3642_v55 }
0x138c   :  { %3524 = vadd.xlane.f32.xlu0 %v3523_v23  ;;  %4279 = vmatpush3.xpose.msk.msra.mxu0 %vm3651_vm7, %v3642_v55 }
0x138e   :  { %v3649_v48 = vpop.permute.xlu1 %3648 }
0x13a2   :  { %3541 = vrot.lane.b32.xlu0 %v3537_v21, %s4438_s12 }
0x13a6   :  { %3639 = vrot.lane.b32.xlu0 %v107_v27, %s4439_s13 }
0x1411   :  { %v3522_v30 = vpop.xlane.xlu0 %3521 }
0x1412   :  { %v3526_v31 = vmul.f32 0.03125, %v3522_v30 }
0x1414   :  { %v3528_v6 = vadd.f32 1e-05, %v3526_v31 }
0x1415   :  { %v3525_v33 = vpop.xlane.xlu0 %3524 }
0x1416   :  { %4380 = vrsqrt.f32 %v3528_v6  ;;  %v3527_v36 = vmul.f32 0.03125, %v3525_v33 }
0x1418   :  { %v3529_v19 = vadd.f32 1e-05, %v3527_v36 }
0x1419   :  { %v3542_v34 = vpop.permute.xlu0 %3541 }
0x141a   :  { %4382 = vrsqrt.f32 %v3529_v19 }
0x141d   :  { %v3640_v41 = vpop.permute.xlu0 %3639 }
0x141e   :  { %4280 = vmatprep.subr.msk.mxu0 %vm3651_vm7, %v3640_v41 }
0x141f   :  { %4281 = vmatpush3.xpose.msk.msra.mxu0 %vm3651_vm7, %v3640_v41 }
0x1423   :  { %v4381_v24 = vpop.eup %4380 }
0x1424   :  { %v3532_v12 = vmul.f32 %v4381_v24, %v3516_v2 }
0x1426   :  { %v3538_v32 = vmul.f32 %v3537_v21, %v3532_v12 }
0x1427   :  { %v4383_v15 = vpop.eup %4382 }
0x1428   :  { %v3533_v50 = vmul.f32 %v4383_v15, %v3517_v5  ;;  %v3544_v35 = vadd.f32 %v3542_v34, %v3538_v32  ;;  %v3771_v5 = vsub.s32 6, %v4532_v8 }
0x142a   :  { %v3539_v37 = vmul.f32 %v3537_v21, %v3533_v50  ;;  %v3546_v38 = vmul.f32 %v3544_v35, %v4811_v18  ;;  %v3772_v2 = vrot.slane %v5095_v20, %v3771_v5 }
0x142c   :  { %v3545_v39 = vadd.f32 %v3542_v34, %v3539_v37  ;;  %4271 = vmatprep.mubr.msk.f32.mxu1 %vm122_vm0, %v3546_v38 }
0x142e   :  { %v3547_v40 = vmul.f32 %v3545_v39, %v4808_v4 }
0x1430   :  { %4272 = vmatmul.mubr.msk.f32.vlgmr.msra.gmra.mxu1 %vm122_vm0, %v3547_v40 }
0x14f0   :  { %v4273_v42 = vpop.f32.mrf.mxu1 }
0x14f1   :  { %v3630_v43 = vadd.f32 %v4273_v42, %v3551_v29 }
0x14f2   :  { %v3624_v46 = vpop.f32.mrf.mxu1 }
0x14f3   :  { %v3625_v49 = vadd.f32 %v3624_v46, %v3551_v29  ;;  %v3634_v53 = vmax.f32 %v3630_v43, 0.0 }
0x14f5   :  { %v3633_v51 = vmax.f32 %v3625_v49, 0.0 }
0x14f7   :  { %4282 = vmatprep.mubr.msk.f32.mxu0 %vm3651_vm7, %v3633_v51 }
0x14f8   :  { %4283 = vmatmul.mubr.msk.f32.vlgmr.msra.gmra.mxu0 %vm3651_vm7, %v3634_v53 }
0x15b8   :  { %v4284_v0 = vpop.f32.mrf.mxu0 }
0x15b9   :  { %v3738_v54 = vadd.f32 %v4284_v0, %v3649_v48 }
0x15ba   :  { %v3732_v11 = vpop.f32.mrf.mxu0 }
0x15bb   :  { %v3742_v57 = vadd.f32 %v3738_v54, %v3547_v40  ;;  %v3733_v58 = vadd.f32 %v3732_v11, %v3649_v48 }
0x15bd   :  { %v3741_v59 = vadd.f32 %v3733_v58, %v3546_v38  ;;  %v3746_v60 = vsel %vm122_vm0, %v3742_v57, 0.0 }
0x15be   :  { %3747 = vadd.xlane.f32.xlu1 %v3746_v60 }
0x15bf   :  { %v3743_v45 = vsel %vm122_vm0, %v3741_v59, 0.0 }
0x15c0   :  { %3744 = vadd.xlane.f32.xlu0 %v3743_v45 }
0x1647   :  { %v3748_v61 = vpop.xlane.xlu1 %3747 }
0x1648   :  { %v3750_v3 = vmul.f32 0.03125, %v3748_v61 }
0x1649   :  { %v3745_v10 = vpop.xlane.xlu0 %3744 }
0x164a   :  { %v3749_v56 = vmul.f32 0.03125, %v3745_v10  ;;  %v3752_v44 = vsub.f32 %v3742_v57, %v3750_v3 }
0x164c   :  { %v3751_v47 = vsub.f32 %v3741_v59, %v3749_v56  ;;  %v3754_v7 = vmul.f32 %v3752_v44, %v3752_v44 }
0x164e   :  { %v3753_v62 = vmul.f32 %v3751_v47, %v3751_v47  ;;  %v3758_v9 = vsel %vm122_vm0, %v3754_v7, 0.0 }
0x1650   :  { %v3755_v63 = vsel %vm122_vm0, %v3753_v62, 0.0 }
0x1651   :  { %3756 = vadd.xlane.f32.xlu0 %v3755_v63 }
0x1655   :  { %3759 = vadd.xlane.f32.xlu0 %v3758_v9 }
0x166b   :  { %3776 = vrot.lane.b32.xlu0 %v3772_v2, %s4438_s12  ;;  %s3790_s12 = sshll.u32 %s4454_s6, 4  ;;  %s3791_s12 = int_to_ptr.vmem [resolvable:$true] %s3790_s12 }
0x166c   :  { %s4409_s13 = scalar_lea.vmem %s3791_s12, 256  ;;  %p4414_p6 = scmp.lt.s32.totalorder %s3791_s12, %s3791_s12 }
0x166d   :  { %p4410_p5 = scmp.ne.s32.totalorder %s3791_s12, %s4409_s13  ;;  %p4415_p7 = scmp.lt.s32.totalorder %s4409_s13, %s4409_s13 }
0x166f   :  { %p4416_p8 = por %p4415_p7, %p4414_p6 }
0x1671   :  { %p4417_p9 = pnand %p4416_p8, %p4410_p5 }
0x16da   :  { %v3757_v13 = vpop.xlane.xlu0 %3756 }
0x16db   :  { %v3761_v16 = vmul.f32 0.03125, %v3757_v13 }
0x16dd   :  { %v3763_v17 = vadd.f32 1e-05, %v3761_v16 }
0x16de   :  { %v3760_v23 = vpop.xlane.xlu0 %3759 }
0x16df   :  { %4384 = vrsqrt.f32 %v3763_v17  ;;  %v3762_v22 = vmul.f32 0.03125, %v3760_v23 }
0x16e1   :  { %v3764_v21 = vadd.f32 1e-05, %v3762_v22 }
0x16e2   :  { %v3777_v26 = vpop.permute.xlu0 %3776 }
0x16e3   :  { %4386 = vrsqrt.f32 %v3764_v21 }
0x16ec   :  { %v4385_v14 = vpop.eup %4384 }
0x16ed   :  { %v3767_v25 = vmul.f32 %v4385_v14, %v3751_v47 }
0x16ef   :  { %v3773_v27 = vmul.f32 %v3772_v2, %v3767_v25 }
0x16f0   :  { %v4387_v28 = vpop.eup %4386 }
0x16f1   :  { %v3768_v29 = vmul.f32 %v4387_v28, %v3752_v44  ;;  %v3779_v30 = vadd.f32 %v3777_v26, %v3773_v27 }
0x16f3   :  { %v3774_v8 = vmul.f32 %v3772_v2, %v3768_v29  ;;  %v3781_v20 = vmul.f32 %v3779_v30, %v4811_v18 }
0x16f5   :  { %v3780_v31 = vadd.f32 %v3777_v26, %v3774_v8  ;;  %3783 = vst.msk [vmem:[#allocation5] sm:$0xff] %vm122_vm0, %v3781_v20 }
0x16f7   :  { %v3782_v6 = vmul.f32 %v3780_v31, %v4808_v4 }
0x16f9   :  { %3784 = vst.msk [vmem:[#allocation5 + $0x8] sm:$0xff] %vm122_vm0, %v3782_v6 }
0x16fa   :  { %4420 = shalt.err (!%p4417_p9)
}
0x16fb   :  { %s4455_s14 = smov 128  }
0x16fc   :  { %3796 = dma.vmem_to_hbm [thread:$0]  %s3791_s12, 256, %s5142_s7, [#allocation4], %s4455_s14, %s4455_s14, %s4449_s26  }
0x16fd   :  { %4431 = dma.done.wait [#allocation4], 256  }
0x16fe   :  { %4432 = vsyncadd [#allocation4], 4294967040 }
0x16ff   :  { %3800 = vsyncpa [#allocation3], 1 }
0x1700   :  { %3801 = vsyncpa [#allocation4], 1 }

</bundles_post_ra>
